<compile_context>
chip_gen: v6e
topology: v6e:2x2x1
jax: 0.10.0
libtpu: 0.0.40
codegen_flags: <defaults>
</compile_context>

<pallas_src>
import functools

import numpy as np

import jax
import jax.numpy as jnp
from jax.experimental import pallas as pl
from jax.experimental.pallas import tpu as pltpu

# ----------------------------------------------------------------------------
# Fixed Net geometry (MNIST LeNet-ish) and batch tile.
# ----------------------------------------------------------------------------
TB = 128                   # default batch rows per grid step (multiple of 8)
H_IN = 28                  # input spatial size
K5 = 5                     # conv kernel size
C1, H1, P1 = 10, 24, 12    # conv1: channels, conv output size, pooled size
C2, H2, P2 = 20, 8, 4      # conv2: channels, conv output size, pooled size
NFEAT = C2 * P2 * P2       # 320
NH, NOUT = 50, 10
NL = 128                   # lane width used for all padded intermediates


# ----------------------------------------------------------------------------
# The single fused Pallas kernel (one batch tile per grid step).
# ----------------------------------------------------------------------------
def _net_kernel(x_ref, w1_ref, b1_ref, s1_ref, w2_ref, b2_ref, s2_ref,
                wf1_ref, bf1_ref, wf2_ref, bf2_ref, out_ref, *, tb):
    f32 = jnp.float32
    bf16 = jnp.bfloat16

    # ---- conv1: one fused banded GEMM, K = 5*28 = 140 -----------------------
    # x_ref block is (24, tb, 140): rows (i, b), lanes = 5 row-bands of x.
    lhs1 = x_ref[...].reshape(H1 * tb, K5 * H_IN)
    y1 = jnp.dot(lhs1, w1_ref[...], preferred_element_type=f32)   # (24*tb, 256)

    # ---- 2x2 max-pool + relu -------------------------------------------------
    # width: single 256-wide even|odd 0/1 selector matmul, max of the halves
    t1 = jnp.dot(y1.astype(bf16), s1_ref[...], preferred_element_type=f32)
    mw1 = jnp.maximum(t1[:, :NL], t1[:, NL:])                     # (24*tb, 128)
    # height: rows are i-major, so even/odd i are tb-row aligned slabs
    mw1 = mw1.reshape(P1, 2 * tb, NL)
    pool1 = jnp.maximum(mw1[:, :tb, :], mw1[:, tb:, :])           # (12, tb, 128)
    pool1 = jnp.maximum(pool1 + b1_ref[...], 0.0)

    # ---- conv2: one fused banded GEMM, K = 5*128 = 640 (aligned bands) -------
    # TODO(synk): nn.Dropout2d / F.dropout are identity in eval mode; no RNG masking.
    p1b = pool1.astype(bf16)
    lhs2 = jnp.concatenate([p1b[di:di + H2] for di in range(K5)], axis=-1)
    lhs2 = lhs2.reshape(H2 * tb, K5 * NL)                         # (8*tb, 640)
    y2 = jnp.dot(lhs2, w2_ref[...], preferred_element_type=f32)   # (8*tb, 256)

    t2 = jnp.dot(y2.astype(bf16), s2_ref[...], preferred_element_type=f32)
    mw2 = jnp.maximum(t2[:, :NL], t2[:, NL:])                     # (8*tb, 128)
    mw2 = mw2.reshape(P2, 2 * tb, NL)
    pool2 = jnp.maximum(mw2[:, :tb, :], mw2[:, tb:, :])           # (4, tb, 128)
    pool2 = jnp.maximum(pool2 + b2_ref[...], 0.0)

    # ---- fc1 + relu: one GEMM, K = 4*128 = 512 (aligned feature slabs) -------
    feats = jnp.concatenate([pool2[p] for p in range(P2)], axis=-1)   # (tb, 512)
    h = jnp.dot(feats.astype(bf16), wf1_ref[...], preferred_element_type=f32)
    h = jnp.maximum(h + bf1_ref[...], 0.0)                        # (tb, 128)

    # ---- fc2 + log_softmax (padded logit columns carry -1e30 via the bias) ---
    z = jnp.dot(h.astype(bf16), wf2_ref[...],
                preferred_element_type=f32) + bf2_ref[...]        # (tb, 128)
    zmax = jnp.max(z, axis=-1, keepdims=True)
    lse = jnp.log(jnp.sum(jnp.exp(z - zmax), axis=-1, keepdims=True))
    out_ref[...] = z - zmax - lse


# ----------------------------------------------------------------------------
# One-time host-side weight transformation (banded conv matrices, width-pool
# selection matrices, regrouped/padded fc weights).  tb-independent.
# ----------------------------------------------------------------------------
def prepare_net(params):
    f32 = np.float32
    w1 = np.asarray(params["conv1_w"], f32)   # (10, 1, 5, 5)
    b1 = np.asarray(params["conv1_b"], f32)
    w2 = np.asarray(params["conv2_w"], f32)   # (20, 10, 5, 5)
    b2 = np.asarray(params["conv2_b"], f32)
    fw1 = np.asarray(params["fc1_w"], f32)    # (50, 320)
    fb1 = np.asarray(params["fc1_b"], f32)
    fw2 = np.asarray(params["fc2_w"], f32)    # (10, 50)
    fb2 = np.asarray(params["fc2_b"], f32)

    # conv1 banded matrix (140, 256): rows = 5 bands of 28, cols = j*10 + c
    w1cat = np.zeros((K5 * H_IN, 2 * NL), f32)
    di, j, dj, c = np.meshgrid(np.arange(K5), np.arange(H1), np.arange(K5),
                               np.arange(C1), indexing="ij")
    w1cat[di * H_IN + j + dj, j * C1 + c] = w1[c, 0, di, dj]

    # pool1 width selector (256, 256): cols [0:128)=even-j pool, [128:256)=odd-j
    s1w = np.zeros((2 * NL, 2 * NL), f32)
    q, c = np.meshgrid(np.arange(P1), np.arange(C1), indexing="ij")
    s1w[2 * q * C1 + c, q * C1 + c] = 1.0
    s1w[(2 * q + 1) * C1 + c, NL + q * C1 + c] = 1.0

    b1row = np.zeros((1, NL), f32)
    b1row[0, :P1 * C1] = np.tile(b1, P1)

    # conv2 banded matrix (640, 256): rows = 5 aligned 128-wide bands of pool1
    w2cat = np.zeros((K5 * NL, 2 * NL), f32)
    di, j2, dj, ci, co = np.meshgrid(np.arange(K5), np.arange(H2), np.arange(K5),
                                     np.arange(C1), np.arange(C2), indexing="ij")
    w2cat[di * NL + (j2 + dj) * C1 + ci, j2 * C2 + co] = w2[co, ci, di, dj]

    s2w = np.zeros((2 * NL, 2 * NL), f32)
    q2, co = np.meshgrid(np.arange(P2), np.arange(C2), indexing="ij")
    s2w[2 * q2 * C2 + co, q2 * C2 + co] = 1.0
    s2w[(2 * q2 + 1) * C2 + co, NL + q2 * C2 + co] = 1.0

    b2row = np.zeros((1, NL), f32)
    b2row[0, :P2 * C2] = np.tile(b2, P2)

    # fc1 (512, 128): kernel lane p2*128 + q2*20 + co == NCHW flat co*16+p2*4+q2
    wfc1 = np.zeros((P2 * NL, NL), f32)
    p2, q2, co, o = np.meshgrid(np.arange(P2), np.arange(P2), np.arange(C2),
                                np.arange(NH), indexing="ij")
    wfc1[p2 * NL + q2 * C2 + co, o] = fw1[o, co * (P2 * P2) + p2 * P2 + q2]

    bfc1row = np.zeros((1, NL), f32)
    bfc1row[0, :NH] = fb1

    # fc2 (128, 128); padded logit columns get -1e30 through the bias row so the
    # in-kernel log_softmax over 128 lanes only "sees" the 10 real classes.
    wfc2 = np.zeros((NL, NL), f32)
    wfc2[:NH, :NOUT] = fw2.T
    bfc2row = np.full((1, NL), -1e30, f32)
    bfc2row[0, :NOUT] = fb2

    bf = lambda a: jnp.asarray(a, dtype=jnp.bfloat16)
    ff = lambda a: jnp.asarray(a, dtype=jnp.float32)
    return {
        "w1cat": bf(w1cat), "b1row": ff(b1row), "s1w": bf(s1w),
        "w2cat": bf(w2cat), "b2row": ff(b2row), "s2w": bf(s2w),
        "wfc1": bf(wfc1), "bfc1row": ff(bfc1row),
        "wfc2": bf(wfc2), "bfc2row": ff(bfc2row),
    }


_WEIGHT_KEYS = ["w1cat", "b1row", "s1w", "w2cat", "b2row", "s2w",
                "wfc1", "bfc1row", "wfc2", "bfc2row"]


def net_forward(prep, x, *, tb=TB):
    """x: (B, 1, 28, 28) f32 NCHW -> (B, 10) log-probs, single pallas_call."""
    B = x.shape[0]
    xb = x.reshape(B, H_IN, H_IN).astype(jnp.bfloat16)   # C==1, metadata reshape

    tb = int(min(tb, max(8, -(-B // 8) * 8)))            # shrink tile for tiny B
    tb = max(8, (tb // 8) * 8)                           # keep multiple of 8
    nb = -(-B // tb)
    bp = nb * tb
    if bp != B:
        xb = jnp.pad(xb, ((0, bp - B), (0, 0), (0, 0)))

    # batch to the sublane axis, then cheap 5-band row expansion (K=140) so the
    # kernel's conv1 is a single fused GEMM with rows ordered (i, b).
    xt = jnp.transpose(xb, (1, 0, 2))                    # (28, bp, 28) bf16
    xbands = jnp.concatenate([xt[di:di + H1] for di in range(K5)],
                             axis=-1)                    # (24, bp, 140) bf16

    w_specs = [pl.BlockSpec(prep[k].shape, lambda i: (0, 0)) for k in _WEIGHT_KEYS]

    out = pl.pallas_call(
        functools.partial(_net_kernel, tb=tb),
        out_shape=jax.ShapeDtypeStruct((bp, NL), jnp.float32),
        grid=(nb,),
        in_specs=[pl.BlockSpec((H1, tb, K5 * H_IN), lambda i: (0, i, 0))] + w_specs,
        out_specs=pl.BlockSpec((tb, NL), lambda i: (i, 0)),
        compiler_params=pltpu.CompilerParams(
            dimension_semantics=("parallel",),
            vmem_limit_bytes=48 * 1024 * 1024),
    )(xbands, *[prep[k] for k in _WEIGHT_KEYS])
    return out[:B, :NOUT]


# ----------------------------------------------------------------------------
# Parameter init (matches the PyTorch module's shapes) and a pure-XLA reference.
# ----------------------------------------------------------------------------
def init_params(key):
    ks = jax.random.split(key, 8)
    s = 0.1
    return {
        "conv1_w": jax.random.normal(ks[0], (10, 1, 5, 5), jnp.float32) * s,
        "conv1_b": jax.random.normal(ks[1], (10,), jnp.float32) * s,
        "conv2_w": jax.random.normal(ks[2], (20, 10, 5, 5), jnp.float32) * s,
        "conv2_b": jax.random.normal(ks[3], (20,), jnp.float32) * s,
        "fc1_w": jax.random.normal(ks[4], (50, 320), jnp.float32) * s,
        "fc1_b": jax.random.normal(ks[5], (50,), jnp.float32) * s,
        "fc2_w": jax.random.normal(ks[6], (10, 50), jnp.float32) * s,
        "fc2_b": jax.random.normal(ks[7], (10,), jnp.float32) * s,
    }


def ref_forward(params, x):
    dn = ("NCHW", "OIHW", "NCHW")
    y = jax.lax.conv_general_dilated(x, params["conv1_w"], (1, 1), "VALID",
                                     dimension_numbers=dn)
    y = y + params["conv1_b"][None, :, None, None]
    y = jax.lax.reduce_window(y, -jnp.inf, jax.lax.max,
                              (1, 1, 2, 2), (1, 1, 2, 2), "VALID")
    y = jnp.maximum(y, 0.0)
    y = jax.lax.conv_general_dilated(y, params["conv2_w"], (1, 1), "VALID",
                                     dimension_numbers=dn)
    y = y + params["conv2_b"][None, :, None, None]
    y = jax.lax.reduce_window(y, -jnp.inf, jax.lax.max,
                              (1, 1, 2, 2), (1, 1, 2, 2), "VALID")
    y = jnp.maximum(y, 0.0)
    y = y.reshape(y.shape[0], NFEAT)
    y = jnp.maximum(y @ params["fc1_w"].T + params["fc1_b"], 0.0)
    z = y @ params["fc2_w"].T + params["fc2_b"]
    return jax.nn.log_softmax(z, axis=-1)


if __name__ == "__main__":
    key = jax.random.PRNGKey(0)
    pkey, xkey, x2key = jax.random.split(key, 3)
    params = init_params(pkey)
    prep = prepare_net(params)                            # one-time weight prep

    # small demo batch (module implies 1x28x28 MNIST-style inputs)
    x = jax.random.normal(xkey, (2, 1, 28, 28), jnp.float32)
    fwd = jax.jit(functools.partial(net_forward, tb=TB))
    out = jax.block_until_ready(fwd(prep, x))

    assert out.shape == (2, 10)
    # log_softmax rows must exponentiate-and-sum to ~1
    assert bool(jnp.all(jnp.abs(jnp.sum(jnp.exp(out), axis=-1) - 1.0) < 1e-3))
    # match the pure-XLA f32 reference (bf16 GEMM operands -> loose tolerance)
    ref = ref_forward(params, x)
    assert bool(jnp.max(jnp.abs(out - ref)) < 0.1), float(jnp.max(jnp.abs(out - ref)))

    # also exercise a multi-step grid (nb=3) with batch padding (B=21, tb=8)
    x2 = jax.random.normal(x2key, (21, 1, 28, 28), jnp.float32)
    fwd2 = jax.jit(functools.partial(net_forward, tb=8))
    out2 = jax.block_until_ready(fwd2(prep, x2))
    ref2 = ref_forward(params, x2)
    assert out2.shape == (21, 10)
    assert bool(jnp.max(jnp.abs(out2 - ref2)) < 0.1), float(jnp.max(jnp.abs(out2 - ref2)))

    print("KERNEL_OK")
</pallas_src>

<mosaic_0001>
module attributes {stable_mosaic.version = 11 : i64} {
  func.func @_net_kernel(%arg0: i32, %arg1: memref<24x8x140xbf16, #tpu.memory_space<vmem>>, %arg2: memref<140x256xbf16, #tpu.memory_space<vmem>>, %arg3: memref<1x128xf32, #tpu.memory_space<vmem>>, %arg4: memref<256x256xbf16, #tpu.memory_space<vmem>>, %arg5: memref<640x256xbf16, #tpu.memory_space<vmem>>, %arg6: memref<1x128xf32, #tpu.memory_space<vmem>>, %arg7: memref<256x256xbf16, #tpu.memory_space<vmem>>, %arg8: memref<512x128xbf16, #tpu.memory_space<vmem>>, %arg9: memref<1x128xf32, #tpu.memory_space<vmem>>, %arg10: memref<128x128xbf16, #tpu.memory_space<vmem>>, %arg11: memref<1x128xf32, #tpu.memory_space<vmem>>, %arg12: memref<8x128xf32, #tpu.memory_space<vmem>>) attributes {dimension_semantics = [#tpu.dimension_semantics<parallel>], iteration_bounds = array<i64: 1>, scalar_prefetch = 0 : i64, scratch_operands = 0 : i64, tpu.core_type = #tpu.core_type<tc>, window_params = [{transform_indices = @transform_0, window_bounds = array<i64: 24, 8, 140>}, {pipeline_mode = #tpu.pipeline_mode<synchronous>, transform_indices = @transform_1, window_bounds = array<i64: 140, 256>}, {pipeline_mode = #tpu.pipeline_mode<synchronous>, transform_indices = @transform_2, window_bounds = array<i64: 1, 128>}, {pipeline_mode = #tpu.pipeline_mode<synchronous>, transform_indices = @transform_3, window_bounds = array<i64: 256, 256>}, {pipeline_mode = #tpu.pipeline_mode<synchronous>, transform_indices = @transform_4, window_bounds = array<i64: 640, 256>}, {pipeline_mode = #tpu.pipeline_mode<synchronous>, transform_indices = @transform_5, window_bounds = array<i64: 1, 128>}, {pipeline_mode = #tpu.pipeline_mode<synchronous>, transform_indices = @transform_6, window_bounds = array<i64: 256, 256>}, {pipeline_mode = #tpu.pipeline_mode<synchronous>, transform_indices = @transform_7, window_bounds = array<i64: 512, 128>}, {pipeline_mode = #tpu.pipeline_mode<synchronous>, transform_indices = @transform_8, window_bounds = array<i64: 1, 128>}, {pipeline_mode = #tpu.pipeline_mode<synchronous>, transform_indices = @transform_9, window_bounds = array<i64: 128, 128>}, {pipeline_mode = #tpu.pipeline_mode<synchronous>, transform_indices = @transform_10, window_bounds = array<i64: 1, 128>}, {transform_indices = @transform_11, window_bounds = array<i64: 8, 128>}]} {
    %c0 = arith.constant 0 : index
    %c0_0 = arith.constant 0 : index
    %c0_1 = arith.constant 0 : index
    %0 = vector.load %arg1[%c0, %c0_0, %c0_1] : memref<24x8x140xbf16, #tpu.memory_space<vmem>>, vector<24x8x140xbf16>
    %1 = vector.shape_cast %0 : vector<24x8x140xbf16> to vector<192x140xbf16>
    %c0_2 = arith.constant 0 : index
    %c0_3 = arith.constant 0 : index
    %2 = vector.load %arg2[%c0_2, %c0_3] : memref<140x256xbf16, #tpu.memory_space<vmem>>, vector<140x256xbf16>
    %cst = arith.constant dense<0.000000e+00> : vector<192x256xf32>
    %3 = tpu.matmul %1, %2, %cst {dimension_numbers = #tpu.dot_dimension_numbers<[1], [0], [0], [1], [0, 0, 1, 1], [], []>} : vector<192x140xbf16>, vector<140x256xbf16>, vector<192x256xf32> -> vector<192x256xf32>
    %4 = arith.truncf %3 : vector<192x256xf32> to vector<192x256xbf16>
    %c0_4 = arith.constant 0 : index
    %c0_5 = arith.constant 0 : index
    %5 = vector.load %arg4[%c0_4, %c0_5] : memref<256x256xbf16, #tpu.memory_space<vmem>>, vector<256x256xbf16>
    %cst_6 = arith.constant dense<0.000000e+00> : vector<192x256xf32>
    %6 = tpu.matmul %4, %5, %cst_6 {dimension_numbers = #tpu.dot_dimension_numbers<[1], [0], [0], [1], [0, 0, 1, 1], [], []>} : vector<192x256xbf16>, vector<256x256xbf16>, vector<192x256xf32> -> vector<192x256xf32>
    %7 = vector.extract_strided_slice %6 {offsets = [0, 0], sizes = [192, 128], strides = [1, 1]} : vector<192x256xf32> to vector<192x128xf32>
    %8 = vector.extract_strided_slice %6 {offsets = [0, 128], sizes = [192, 128], strides = [1, 1]} : vector<192x256xf32> to vector<192x128xf32>
    %9 = arith.maximumf %7, %8 : vector<192x128xf32>
    %10 = vector.shape_cast %9 : vector<192x128xf32> to vector<12x16x128xf32>
    %11 = vector.extract_strided_slice %10 {offsets = [0, 0, 0], sizes = [12, 8, 128], strides = [1, 1, 1]} : vector<12x16x128xf32> to vector<12x8x128xf32>
    %12 = vector.extract_strided_slice %10 {offsets = [0, 8, 0], sizes = [12, 8, 128], strides = [1, 1, 1]} : vector<12x16x128xf32> to vector<12x8x128xf32>
    %13 = arith.maximumf %11, %12 : vector<12x8x128xf32>
    %c0_7 = arith.constant 0 : index
    %c0_8 = arith.constant 0 : index
    %14 = vector.load %arg3[%c0_7, %c0_8] : memref<1x128xf32, #tpu.memory_space<vmem>>, vector<1x128xf32>
    %15 = vector.shape_cast %14 : vector<1x128xf32> to vector<1x1x128xf32>
    %16 = vector.broadcast %15 : vector<1x1x128xf32> to vector<12x8x128xf32>
    %17 = arith.addf %13, %16 : vector<12x8x128xf32>
    %cst_9 = arith.constant 0.000000e+00 : f32
    %18 = vector.broadcast %cst_9 : f32 to vector<12x8x128xf32>
    %19 = arith.maximumf %17, %18 : vector<12x8x128xf32>
    %20 = arith.truncf %19 : vector<12x8x128xf32> to vector<12x8x128xbf16>
    %21 = vector.extract_strided_slice %20 {offsets = [0, 0, 0], sizes = [8, 8, 128], strides = [1, 1, 1]} : vector<12x8x128xbf16> to vector<8x8x128xbf16>
    %22 = vector.extract_strided_slice %20 {offsets = [1, 0, 0], sizes = [8, 8, 128], strides = [1, 1, 1]} : vector<12x8x128xbf16> to vector<8x8x128xbf16>
    %23 = vector.extract_strided_slice %20 {offsets = [2, 0, 0], sizes = [8, 8, 128], strides = [1, 1, 1]} : vector<12x8x128xbf16> to vector<8x8x128xbf16>
    %24 = vector.extract_strided_slice %20 {offsets = [3, 0, 0], sizes = [8, 8, 128], strides = [1, 1, 1]} : vector<12x8x128xbf16> to vector<8x8x128xbf16>
    %25 = vector.extract_strided_slice %20 {offsets = [4, 0, 0], sizes = [8, 8, 128], strides = [1, 1, 1]} : vector<12x8x128xbf16> to vector<8x8x128xbf16>
    %26 = tpu.concatenate %21, %22, %23, %24, %25 in 2 : vector<8x8x128xbf16>, vector<8x8x128xbf16>, vector<8x8x128xbf16>, vector<8x8x128xbf16>, vector<8x8x128xbf16> -> vector<8x8x640xbf16>
    %27 = vector.shape_cast %26 : vector<8x8x640xbf16> to vector<64x640xbf16>
    %c0_10 = arith.constant 0 : index
    %c0_11 = arith.constant 0 : index
    %28 = vector.load %arg5[%c0_10, %c0_11] : memref<640x256xbf16, #tpu.memory_space<vmem>>, vector<640x256xbf16>
    %cst_12 = arith.constant dense<0.000000e+00> : vector<64x256xf32>
    %29 = tpu.matmul %27, %28, %cst_12 {dimension_numbers = #tpu.dot_dimension_numbers<[1], [0], [0], [1], [0, 0, 1, 1], [], []>} : vector<64x640xbf16>, vector<640x256xbf16>, vector<64x256xf32> -> vector<64x256xf32>
    %30 = arith.truncf %29 : vector<64x256xf32> to vector<64x256xbf16>
    %c0_13 = arith.constant 0 : index
    %c0_14 = arith.constant 0 : index
    %31 = vector.load %arg7[%c0_13, %c0_14] : memref<256x256xbf16, #tpu.memory_space<vmem>>, vector<256x256xbf16>
    %cst_15 = arith.constant dense<0.000000e+00> : vector<64x256xf32>
    %32 = tpu.matmul %30, %31, %cst_15 {dimension_numbers = #tpu.dot_dimension_numbers<[1], [0], [0], [1], [0, 0, 1, 1], [], []>} : vector<64x256xbf16>, vector<256x256xbf16>, vector<64x256xf32> -> vector<64x256xf32>
    %33 = vector.extract_strided_slice %32 {offsets = [0, 0], sizes = [64, 128], strides = [1, 1]} : vector<64x256xf32> to vector<64x128xf32>
    %34 = vector.extract_strided_slice %32 {offsets = [0, 128], sizes = [64, 128], strides = [1, 1]} : vector<64x256xf32> to vector<64x128xf32>
    %35 = arith.maximumf %33, %34 : vector<64x128xf32>
    %36 = vector.shape_cast %35 : vector<64x128xf32> to vector<4x16x128xf32>
    %37 = vector.extract_strided_slice %36 {offsets = [0, 0, 0], sizes = [4, 8, 128], strides = [1, 1, 1]} : vector<4x16x128xf32> to vector<4x8x128xf32>
    %38 = vector.extract_strided_slice %36 {offsets = [0, 8, 0], sizes = [4, 8, 128], strides = [1, 1, 1]} : vector<4x16x128xf32> to vector<4x8x128xf32>
    %39 = arith.maximumf %37, %38 : vector<4x8x128xf32>
    %c0_16 = arith.constant 0 : index
    %c0_17 = arith.constant 0 : index
    %40 = vector.load %arg6[%c0_16, %c0_17] : memref<1x128xf32, #tpu.memory_space<vmem>>, vector<1x128xf32>
    %41 = vector.shape_cast %40 : vector<1x128xf32> to vector<1x1x128xf32>
    %42 = vector.broadcast %41 : vector<1x1x128xf32> to vector<4x8x128xf32>
    %43 = arith.addf %39, %42 : vector<4x8x128xf32>
    %cst_18 = arith.constant 0.000000e+00 : f32
    %44 = vector.broadcast %cst_18 : f32 to vector<4x8x128xf32>
    %45 = arith.maximumf %43, %44 : vector<4x8x128xf32>
    %46 = vector.extract_strided_slice %45 {offsets = [0, 0, 0], sizes = [1, 8, 128], strides = [1, 1, 1]} : vector<4x8x128xf32> to vector<1x8x128xf32>
    %47 = vector.shape_cast %46 : vector<1x8x128xf32> to vector<8x128xf32>
    %48 = vector.extract_strided_slice %45 {offsets = [1, 0, 0], sizes = [1, 8, 128], strides = [1, 1, 1]} : vector<4x8x128xf32> to vector<1x8x128xf32>
    %49 = vector.shape_cast %48 : vector<1x8x128xf32> to vector<8x128xf32>
    %50 = vector.extract_strided_slice %45 {offsets = [2, 0, 0], sizes = [1, 8, 128], strides = [1, 1, 1]} : vector<4x8x128xf32> to vector<1x8x128xf32>
    %51 = vector.shape_cast %50 : vector<1x8x128xf32> to vector<8x128xf32>
    %52 = vector.extract_strided_slice %45 {offsets = [3, 0, 0], sizes = [1, 8, 128], strides = [1, 1, 1]} : vector<4x8x128xf32> to vector<1x8x128xf32>
    %53 = vector.shape_cast %52 : vector<1x8x128xf32> to vector<8x128xf32>
    %54 = tpu.concatenate %47, %49, %51, %53 in 1 : vector<8x128xf32>, vector<8x128xf32>, vector<8x128xf32>, vector<8x128xf32> -> vector<8x512xf32>
    %55 = arith.truncf %54 : vector<8x512xf32> to vector<8x512xbf16>
    %c0_19 = arith.constant 0 : index
    %c0_20 = arith.constant 0 : index
    %56 = vector.load %arg8[%c0_19, %c0_20] : memref<512x128xbf16, #tpu.memory_space<vmem>>, vector<512x128xbf16>
    %cst_21 = arith.constant dense<0.000000e+00> : vector<8x128xf32>
    %57 = tpu.matmul %55, %56, %cst_21 {dimension_numbers = #tpu.dot_dimension_numbers<[1], [0], [0], [1], [0, 0, 1, 1], [], []>} : vector<8x512xbf16>, vector<512x128xbf16>, vector<8x128xf32> -> vector<8x128xf32>
    %c0_22 = arith.constant 0 : index
    %c0_23 = arith.constant 0 : index
    %58 = vector.load %arg9[%c0_22, %c0_23] : memref<1x128xf32, #tpu.memory_space<vmem>>, vector<1x128xf32>
    %59 = vector.broadcast %58 : vector<1x128xf32> to vector<8x128xf32>
    %60 = arith.addf %57, %59 : vector<8x128xf32>
    %cst_24 = arith.constant 0.000000e+00 : f32
    %61 = vector.broadcast %cst_24 : f32 to vector<8x128xf32>
    %62 = arith.maximumf %60, %61 : vector<8x128xf32>
    %63 = arith.truncf %62 : vector<8x128xf32> to vector<8x128xbf16>
    %c0_25 = arith.constant 0 : index
    %c0_26 = arith.constant 0 : index
    %64 = vector.load %arg10[%c0_25, %c0_26] : memref<128x128xbf16, #tpu.memory_space<vmem>>, vector<128x128xbf16>
    %cst_27 = arith.constant dense<0.000000e+00> : vector<8x128xf32>
    %65 = tpu.matmul %63, %64, %cst_27 {dimension_numbers = #tpu.dot_dimension_numbers<[1], [0], [0], [1], [0, 0, 1, 1], [], []>} : vector<8x128xbf16>, vector<128x128xbf16>, vector<8x128xf32> -> vector<8x128xf32>
    %c0_28 = arith.constant 0 : index
    %c0_29 = arith.constant 0 : index
    %66 = vector.load %arg11[%c0_28, %c0_29] : memref<1x128xf32, #tpu.memory_space<vmem>>, vector<1x128xf32>
    %67 = vector.broadcast %66 : vector<1x128xf32> to vector<8x128xf32>
    %68 = arith.addf %65, %67 : vector<8x128xf32>
    %cst_30 = arith.constant dense<0xFF800000> : vector<8xf32>
    %69 = vector.multi_reduction <maximumf>, %68, %cst_30 [1] : vector<8x128xf32> to vector<8xf32>
    %70 = vector.shape_cast %69 : vector<8xf32> to vector<8x1xf32>
    %71 = vector.broadcast %70 : vector<8x1xf32> to vector<8x128xf32>
    %72 = arith.subf %68, %71 : vector<8x128xf32>
    %73 = math.exp %72 : vector<8x128xf32>
    %cst_31 = arith.constant dense<0.000000e+00> : vector<8xf32>
    %74 = vector.multi_reduction <add>, %73, %cst_31 [1] : vector<8x128xf32> to vector<8xf32>
    %75 = vector.shape_cast %74 : vector<8xf32> to vector<8x1xf32>
    %76 = math.log %75 : vector<8x1xf32>
    %77 = vector.broadcast %70 : vector<8x1xf32> to vector<8x128xf32>
    %78 = arith.subf %68, %77 : vector<8x128xf32>
    %79 = vector.broadcast %76 : vector<8x1xf32> to vector<8x128xf32>
    %80 = arith.subf %78, %79 : vector<8x128xf32>
    %c0_32 = arith.constant 0 : index
    %c0_33 = arith.constant 0 : index
    %81 = vector.load %arg12[%c0_32, %c0_33] : memref<8x128xf32, #tpu.memory_space<vmem>>, vector<8x128xf32>
    tpu.vector_store %arg12[%c0_32, %c0_33], %80 {strides = array<i32>} : memref<8x128xf32, #tpu.memory_space<vmem>>, vector<8x128xf32>,
    return
  }
  func.func @transform_0(%arg0: i32) -> (i32, i32, i32) {
    %c0_i32 = arith.constant 0 : i32
    %c0_i32_0 = arith.constant 0 : i32
    %c0_i32_1 = arith.constant 0 : i32
    return %c0_i32, %arg0, %c0_i32_0 : i32, i32, i32
  }
  func.func @transform_1(%arg0: i32) -> (i32, i32) {
    %c0_i32 = arith.constant 0 : i32
    %c0_i32_0 = arith.constant 0 : i32
    %c0_i32_1 = arith.constant 0 : i32
    return %c0_i32, %c0_i32_0 : i32, i32
  }
  func.func @transform_2(%arg0: i32) -> (i32, i32) {
    %c0_i32 = arith.constant 0 : i32
    %c0_i32_0 = arith.constant 0 : i32
    %c0_i32_1 = arith.constant 0 : i32
    return %c0_i32, %c0_i32_0 : i32, i32
  }
  func.func @transform_3(%arg0: i32) -> (i32, i32) {
    %c0_i32 = arith.constant 0 : i32
    %c0_i32_0 = arith.constant 0 : i32
    %c0_i32_1 = arith.constant 0 : i32
    return %c0_i32, %c0_i32_0 : i32, i32
  }
  func.func @transform_4(%arg0: i32) -> (i32, i32) {
    %c0_i32 = arith.constant 0 : i32
    %c0_i32_0 = arith.constant 0 : i32
    %c0_i32_1 = arith.constant 0 : i32
    return %c0_i32, %c0_i32_0 : i32, i32
  }
  func.func @transform_5(%arg0: i32) -> (i32, i32) {
    %c0_i32 = arith.constant 0 : i32
    %c0_i32_0 = arith.constant 0 : i32
    %c0_i32_1 = arith.constant 0 : i32
    return %c0_i32, %c0_i32_0 : i32, i32
  }
  func.func @transform_6(%arg0: i32) -> (i32, i32) {
    %c0_i32 = arith.constant 0 : i32
    %c0_i32_0 = arith.constant 0 : i32
    %c0_i32_1 = arith.constant 0 : i32
    return %c0_i32, %c0_i32_0 : i32, i32
  }
  func.func @transform_7(%arg0: i32) -> (i32, i32) {
    %c0_i32 = arith.constant 0 : i32
    %c0_i32_0 = arith.constant 0 : i32
    %c0_i32_1 = arith.constant 0 : i32
    return %c0_i32, %c0_i32_0 : i32, i32
  }
  func.func @transform_8(%arg0: i32) -> (i32, i32) {
    %c0_i32 = arith.constant 0 : i32
    %c0_i32_0 = arith.constant 0 : i32
    %c0_i32_1 = arith.constant 0 : i32
    return %c0_i32, %c0_i32_0 : i32, i32
  }
  func.func @transform_9(%arg0: i32) -> (i32, i32) {
    %c0_i32 = arith.constant 0 : i32
    %c0_i32_0 = arith.constant 0 : i32
    %c0_i32_1 = arith.constant 0 : i32
    return %c0_i32, %c0_i32_0 : i32, i32
  }
  func.func @transform_10(%arg0: i32) -> (i32, i32) {
    %c0_i32 = arith.constant 0 : i32
    %c0_i32_0 = arith.constant 0 : i32
    %c0_i32_1 = arith.constant 0 : i32
    return %c0_i32, %c0_i32_0 : i32, i32
  }
  func.func @transform_11(%arg0: i32) -> (i32, i32) {
    %c0_i32 = arith.constant 0 : i32
    %c0_i32_0 = arith.constant 0 : i32
    return %arg0, %c0_i32 : i32, i32
  }
}

</mosaic_0001>

<bundles_post_ra>
// kernel: net_forward.1
= control target key start
LH: loop header
LB: loop body
LE: loop exit
PB: predicated region body
PF: predicated region fallthrough
CT: control target
= control target key end

     0   :  { %vm277_vm0 = vcmask 97280   ;;  %vm314_vm1 = vcmask 1045504   ;;  %vm3108_vm2 = vmmov 0   ;;  %s3894_s1 = inlined_call_operand.vmem [shape: bf16[140,256], index: 1, kind: input, shape index: {}]   ;;  %s3895_s0 = inlined_call_operand.vmem [shape: bf16[24,8,140], index: 0, kind: input, shape index: {}]   ;;  %s3896_s3 = inlined_call_operand.vmem [shape: bf16[256,256], index: 3, kind: input, shape index: {}]   ;;  %s3897_s4 = inlined_call_operand.vmem [shape: bf16[640,256], index: 4, kind: input, shape index: {}]   ;;  %s3898_s2 = inlined_call_operand.vmem [shape: f32[1,128], index: 2, kind: input, shape index: {}]   ;;  %s3899_s6 = inlined_call_operand.vmem [shape: bf16[256,256], index: 6, kind: input, shape index: {}]   ;;  %s3900_s7 = inlined_call_operand.vmem [shape: bf16[512,128], index: 7, kind: input, shape index: {}]   ;;  %s3901_s5 = inlined_call_operand.vmem [shape: f32[1,128], index: 5, kind: input, shape index: {}]   ;;  %s3902_s9 = inlined_call_operand.vmem [shape: bf16[128,128], index: 9, kind: input, shape index: {}]   ;;  %s3903_s8 = inlined_call_operand.vmem [shape: f32[1,128], index: 8, kind: input, shape index: {}]   ;;  %s3904_s10 = inlined_call_operand.vmem [shape: f32[1,128], index: 10, kind: input, shape index: {}]   ;;  %s3905_s11 = inlined_call_operand.vmem [shape: f32[8,128], index: 11, kind: output, shape index: {}]  }
   0x1   :  { %v2783_v0 = vld [vmem:[%s3894_s1 + $0x74] ss:$8 sps:$4 sm:$0xff]   ;;  %v2785_v1 = vld [vmem:[%s3894_s1 + $0x70] ss:$8 sps:$4 sm:$0xff]   ;;  %v2786_v2 = vld [vmem:[%s3894_s1 + $0x64] ss:$8 sps:$4 sm:$0xff]  }
   0x2   :  { %321 = vmatprep.subr.bf16.mxu0 %v2783_v0  ;;  %v2788_v3 = vld [vmem:[%s3894_s1 + $0x60] ss:$8 sps:$4 sm:$0xff]   ;;  %v2789_v4 = vld [vmem:[%s3894_s1 + $0x54] ss:$8 sps:$4 sm:$0xff]   ;;  %v2791_v5 = vld [vmem:[%s3894_s1 + $0x50] ss:$8 sps:$4 sm:$0xff]  }
   0x3   :  { %322 = vmatpush1.bf16.msra.mxu0 %v2785_v1  ;;  %v2792_v6 = vld [vmem:[%s3894_s1 + $0x44] ss:$8 sps:$4 sm:$0xff]   ;;  %v2794_v7 = vld [vmem:[%s3894_s1 + $0x40] ss:$8 sps:$4 sm:$0xff]   ;;  %v2795_v8 = vld [vmem:[%s3894_s1 + $0x34] ss:$8 sps:$4 sm:$0xff]  }
   0x4   :  { %323 = vmatprep.subr.bf16.mxu0 %v2786_v2  ;;  %v2812_v9 = vld [vmem:[%s3895_s0 + $0x4] ss:$8 sps:$4 sm:$0xff]   ;;  %v2797_v10 = vld [vmem:[%s3894_s1 + $0x30] ss:$8 sps:$4 sm:$0xff]   ;;  %v2800_v12 = vld [vmem:[%s3894_s1 + $0x20] ss:$8 sps:$4 sm:$0xff]  }
   0x5   :  { %2485 = vmatprep.mubr.msk.bf16.mxu0 %vm277_vm0, %v2812_v9  ;;  %v2798_v11 = vld [vmem:[%s3894_s1 + $0x24] ss:$8 sps:$4 sm:$0xff]   ;;  %v2801_v13 = vld [vmem:[%s3894_s1 + $0x14] ss:$8 sps:$4 sm:$0xff]   ;;  %v2803_v14 = vld [vmem:[%s3894_s1 + $0x10] ss:$8 sps:$4 sm:$0xff]  }
   0x6   :  { %v2804_v15 = vld [vmem:[%s3894_s1 + $0x4] ss:$8 sps:$4 sm:$0xff]   ;;  %v2806_v17 = vld [vmem:[%s3894_s1] ss:$8 sps:$4 sm:$0xff]   ;;  %v2846_v19 = vld [vmem:[%s3896_s3 + $0x74] ss:$8 sps:$4 sm:$0xff]  }
   0x7   :  { %324 = vmatpush1.bf16.msra.mxu0 %v2788_v3  ;;  %v2807_v16 = vld [vmem:[%s3894_s1 + $0x84] ss:$8 sps:$4 sm:$0x3f]   ;;  %v2809_v18 = vld [vmem:[%s3894_s1 + $0x80] ss:$8 sps:$4 sm:$0x3f]   ;;  %690 = vmatprep.subr.bf16.mxu1 %v2846_v19 }
   0x8   :  { %325 = vmatprep.subr.bf16.mxu0 %v2789_v4  ;;  %v2848_v20 = vld [vmem:[%s3896_s3 + $0x70] ss:$8 sps:$4 sm:$0xff]   ;;  %v2849_v21 = vld [vmem:[%s3896_s3 + $0x64] ss:$8 sps:$4 sm:$0xff]   ;;  %v2851_v22 = vld [vmem:[%s3896_s3 + $0x60] ss:$8 sps:$4 sm:$0xff]  }
   0x9   :  { %691 = vmatpush1.bf16.msra.mxu1 %v2848_v20  ;;  %v316_v23 = vsel %vm314_vm1, %v2809_v18, 0  ;;  %v2852_v24 = vld [vmem:[%s3896_s3 + $0x54] ss:$8 sps:$4 sm:$0xff]   ;;  %v2810_v25 = vld [vmem:[%s3895_s0] ss:$8 sps:$4 sm:$0xff]  }
   0xa   :  { %692 = vmatprep.subr.bf16.mxu1 %v2849_v21  ;;  %v2813_v26 = vld [vmem:[%s3895_s0 + $0x14] ss:$8 sps:$4 sm:$0xff]   ;;  %v2854_v27 = vld [vmem:[%s3896_s3 + $0x50] ss:$8 sps:$4 sm:$0xff]   ;;  %v2855_v28 = vld [vmem:[%s3896_s3 + $0x44] ss:$8 sps:$4 sm:$0xff]  }
   0xb   :  { %326 = vmatpush1.bf16.msra.mxu0 %v2791_v5  ;;  %v2857_v29 = vld [vmem:[%s3896_s3 + $0x40] ss:$8 sps:$4 sm:$0xff]   ;;  %v2858_v30 = vld [vmem:[%s3896_s3 + $0x34] ss:$8 sps:$4 sm:$0xff]   ;;  %v2815_v31 = vld [vmem:[%s3895_s0 + $0x10] ss:$8 sps:$4 sm:$0xff]  }
   0xc   :  { %327 = vmatprep.subr.bf16.mxu0 %v2792_v6  ;;  %v2816_v32 = vld [vmem:[%s3895_s0 + $0x24] ss:$8 sps:$4 sm:$0xff]   ;;  %v2860_v33 = vld [vmem:[%s3896_s3 + $0x30] ss:$8 sps:$4 sm:$0xff]   ;;  %v2863_v35 = vld [vmem:[%s3896_s3 + $0x20] ss:$8 sps:$4 sm:$0xff]  }
   0xd   :  { %693 = vmatpush1.bf16.msra.mxu1 %v2851_v22  ;;  %v2861_v34 = vld [vmem:[%s3896_s3 + $0x24] ss:$8 sps:$4 sm:$0xff]   ;;  %v2864_v36 = vld [vmem:[%s3896_s3 + $0x14] ss:$8 sps:$4 sm:$0xff]   ;;  %v2818_v37 = vld [vmem:[%s3895_s0 + $0x20] ss:$8 sps:$4 sm:$0xff]  }
   0xe   :  { %694 = vmatprep.subr.bf16.mxu1 %v2852_v24  ;;  %v2819_v38 = vld [vmem:[%s3895_s0 + $0x34] ss:$8 sps:$4 sm:$0xff]   ;;  %v2866_v39 = vld [vmem:[%s3896_s3 + $0x10] ss:$8 sps:$4 sm:$0xff]   ;;  %v2867_v40 = vld [vmem:[%s3896_s3 + $0x4] ss:$8 sps:$4 sm:$0xff]  }
   0xf   :  { %328 = vmatpush1.bf16.msra.mxu0 %v2794_v7  ;;  %v2869_v41 = vld [vmem:[%s3896_s3] ss:$8 sps:$4 sm:$0xff]   ;;  %v2870_v42 = vld [vmem:[%s3896_s3 + $0xf4] ss:$8 sps:$4 sm:$0xff]   ;;  %v2821_v43 = vld [vmem:[%s3895_s0 + $0x30] ss:$8 sps:$4 sm:$0xff]  }
  0x10   :  { %329 = vmatprep.subr.bf16.mxu0 %v2795_v8  ;;  %v2822_v44 = vld [vmem:[%s3895_s0 + $0x44] ss:$8 sps:$4 sm:$0xff]   ;;  %v2872_v45 = vld [vmem:[%s3896_s3 + $0xf0] ss:$8 sps:$4 sm:$0xff]   ;;  %v2875_v47 = vld [vmem:[%s3896_s3 + $0xe0] ss:$8 sps:$4 sm:$0xff]  }
  0x11   :  { %695 = vmatpush1.bf16.msra.mxu1 %v2854_v27  ;;  %v2873_v46 = vld [vmem:[%s3896_s3 + $0xe4] ss:$8 sps:$4 sm:$0xff]   ;;  %v2876_v48 = vld [vmem:[%s3896_s3 + $0xd4] ss:$8 sps:$4 sm:$0xff]   ;;  %v2824_v49 = vld [vmem:[%s3895_s0 + $0x40] ss:$8 sps:$4 sm:$0xff]  }
  0x12   :  { %696 = vmatprep.subr.bf16.mxu1 %v2855_v28  ;;  %v2825_v50 = vld [vmem:[%s3895_s0 + $0x54] ss:$8 sps:$4 sm:$0xff]   ;;  %v2878_v51 = vld [vmem:[%s3896_s3 + $0xd0] ss:$8 sps:$4 sm:$0xff]   ;;  %v2879_v52 = vld [vmem:[%s3896_s3 + $0xc4] ss:$8 sps:$4 sm:$0xff]  }
  0x13   :  { %330 = vmatpush1.bf16.msra.mxu0 %v2797_v10  ;;  %v2881_v53 = vld [vmem:[%s3896_s3 + $0xc0] ss:$8 sps:$4 sm:$0xff]   ;;  %v2882_v54 = vld [vmem:[%s3896_s3 + $0xb4] ss:$8 sps:$4 sm:$0xff]   ;;  %v2827_v55 = vld [vmem:[%s3895_s0 + $0x50] ss:$8 sps:$4 sm:$0xff]  }
  0x14   :  { %331 = vmatprep.subr.bf16.mxu0 %v2798_v11  ;;  %v2828_v56 = vld [vmem:[%s3895_s0 + $0x64] ss:$8 sps:$4 sm:$0xff]   ;;  %v2884_v57 = vld [vmem:[%s3896_s3 + $0xb0] ss:$8 sps:$4 sm:$0xff]   ;;  %v2887_v59 = vld [vmem:[%s3896_s3 + $0xa0] ss:$8 sps:$4 sm:$0xff]  }
  0x15   :  { %697 = vmatpush1.bf16.msra.mxu1 %v2857_v29  ;;  %v2885_v58 = vld [vmem:[%s3896_s3 + $0xa4] ss:$8 sps:$4 sm:$0xff]   ;;  %v2830_v60 = vld [vmem:[%s3895_s0 + $0x60] ss:$8 sps:$4 sm:$0xff]   ;;  %v2831_v61 = vld [vmem:[%s3895_s0 + $0x74] ss:$8 sps:$4 sm:$0xff]  }
  0x16   :  { %698 = vmatprep.subr.bf16.mxu1 %v2858_v30  ;;  %v2833_v62 = vld [vmem:[%s3895_s0 + $0x70] ss:$8 sps:$4 sm:$0xff]   ;;  %v2834_v63 = vld [vmem:[%s3895_s0 + $0x84] ss:$8 sps:$4 sm:$0xff]   ;;  %v2836_v0 = vld [vmem:[%s3895_s0 + $0x80] ss:$8 sps:$4 sm:$0xff]  }
  0x17   :  { %332 = vmatpush1.bf16.msra.mxu0 %v2800_v12  ;;  %v2837_v1 = vld [vmem:[%s3895_s0 + $0x94] ss:$8 sps:$4 sm:$0xff]   ;;  %v2890_v3 = vld [vmem:[%s3896_s3 + $0x90] ss:$8 sps:$4 sm:$0xff]   ;;  %v2891_v5 = vld [vmem:[%s3896_s3 + $0x84] ss:$8 sps:$4 sm:$0xff]  }
  0x18   :  { %333 = vmatprep.subr.bf16.mxu0 %v2801_v13  ;;  %v2888_v2 = vld [vmem:[%s3896_s3 + $0x94] ss:$8 sps:$4 sm:$0xff]   ;;  %v2839_v4 = vld [vmem:[%s3895_s0 + $0x90] ss:$8 sps:$4 sm:$0xff]   ;;  %v2840_v6 = vld [vmem:[%s3895_s0 + $0xa4] ss:$8 sps:$4 sm:$0xff]  }
  0x19   :  { %699 = vmatpush1.bf16.msra.mxu1 %v2860_v33  ;;  %v2893_v7 = vld [vmem:[%s3896_s3 + $0x80] ss:$8 sps:$4 sm:$0xff]   ;;  %v2843_v9 = vld [vmem:[%s3895_s0 + $0xb4] ss:$8 sps:$4 sm:$0xff]   ;;  %v2845_v10 = vld [vmem:[%s3895_s0 + $0xb0] ss:$8 sps:$4 sm:$0xff]  }
  0x1a   :  { %700 = vmatprep.subr.bf16.mxu1 %v2861_v34  ;;  %v2842_v8 = vld [vmem:[%s3895_s0 + $0xa0] ss:$8 sps:$4 sm:$0xff]   ;;  %v2894_v11 = vld [vmem:[%s3897_s4 + $0x70] ss:$8 sps:$4 sm:$0xff]   ;;  %v2896_v12 = vld [vmem:[%s3897_s4 + $0x74] ss:$8 sps:$4 sm:$0xff]  }
  0x1b   :  { %334 = vmatpush1.bf16.msra.mxu0 %v2803_v14  ;;  %v2899_v13 = vld [vmem:[%s3897_s4 + $0x64] ss:$8 sps:$4 sm:$0xff]   ;;  %v2897_v14 = vld [vmem:[%s3897_s4 + $0x60] ss:$8 sps:$4 sm:$0xff]   ;;  %v2908_v20 = vld [vmem:[%s3897_s4 + $0x34] ss:$8 sps:$4 sm:$0xff]  }
  0x1c   :  { %335 = vmatprep.subr.bf16.mxu0 %v2804_v15  ;;  %v2902_v15 = vld [vmem:[%s3897_s4 + $0x54] ss:$8 sps:$4 sm:$0xff]   ;;  %v2905_v18 = vld [vmem:[%s3897_s4 + $0x44] ss:$8 sps:$4 sm:$0xff]   ;;  %v2903_v19 = vld [vmem:[%s3897_s4 + $0x40] ss:$8 sps:$4 sm:$0xff]  }
  0x1d   :  { %701 = vmatpush1.bf16.msra.mxu1 %v2863_v35  ;;  %v2906_v21 = vld [vmem:[%s3897_s4 + $0x30] ss:$8 sps:$4 sm:$0xff]   ;;  %v2914_v22 = vld [vmem:[%s3897_s4 + $0x24] ss:$8 sps:$4 sm:$0xff]   ;;  %v2920_v24 = vld [vmem:[%s3897_s4 + $0x14] ss:$8 sps:$4 sm:$0xff]  }
  0x1e   :  { %702 = vmatprep.subr.bf16.mxu1 %v2864_v36  ;;  %v2924_v27 = vld [vmem:[%s3897_s4] ss:$8 sps:$4 sm:$0xff]   ;;  %v2909_v33 = vld [vmem:[%s3897_s4 + $0x170] ss:$8 sps:$4 sm:$0xff]   ;;  %v2917_v36 = vld [vmem:[%s3897_s4 + $0x164] ss:$8 sps:$4 sm:$0xff]  }
  0x1f   :  { %336 = vmatpush1.bf16.msra.mxu0 %v2806_v17  ;;  %v2900_v17 = vld [vmem:[%s3897_s4 + $0x50] ss:$8 sps:$4 sm:$0xff]  }
  0x20   :  { %2484 = vmatprep.subr.msk.bf16.mxu0 %vm314_vm1, %v2807_v16  ;;  %v2911_v16 = vld [vmem:[%s3897_s4 + $0x174] ss:$8 sps:$4 sm:$0xff]  }
  0x21   :  { %703 = vmatpush1.bf16.msra.mxu1 %v2866_v39 }
  0x22   :  { %704 = vmatprep.subr.bf16.mxu1 %v2867_v40  ;;  %v2923_v40 = vld [vmem:[%s3897_s4 + $0x154] ss:$8 sps:$4 sm:$0xff]  }
  0x23   :  { %352 = vmatpush2.bf16.msra.mxu0 %v316_v23  ;;  %v2912_v23 = vld [vmem:[%s3897_s4 + $0x20] ss:$8 sps:$4 sm:$0xff]  }
  0x24   :  { %1448 = vmatprep.subr.bf16.mxu0 %v2896_v12 }
  0x25   :  { %705 = vmatpush1.bf16.msra.mxu1 %v2869_v41 }
  0x26   :  { %354 = vmatmul.mubr.bf16.vlgmr.msra.gmra.mxu0 %v2810_v25  ;;  %706 = vmatprep.subr.bf16.mxu1 %v2870_v42  ;;  %v2918_v25 = vld [vmem:[%s3897_s4 + $0x10] ss:$8 sps:$4 sm:$0xff]  }
  0x27   :  { %2486 = vmatprep.mubr.msk.bf16.mxu0 %vm277_vm0, %v2813_v26  ;;  %1449 = vmatpush1.bf16.msra.mxu0 %v2894_v11  ;;  %v2926_v26 = vld [vmem:[%s3897_s4 + $0x4] ss:$8 sps:$4 sm:$0xff]  }
  0x28   :  { %1450 = vmatprep.subr.bf16.mxu0 %v2899_v13 }
  0x29   :  { %707 = vmatpush2.bf16.msra.mxu1 %v2872_v45 }
  0x2a   :  { %708 = vmatprep.subr.bf16.mxu1 %v2873_v46  ;;  %v2929_v46 = vld [vmem:[%s3897_s4 + $0x144] ss:$8 sps:$4 sm:$0xff]  }
  0x2b   :  { %1451 = vmatpush1.bf16.msra.mxu0 %v2897_v14 }
  0x2c   :  { %1452 = vmatprep.subr.bf16.mxu0 %v2902_v15 }
  0x2d   :  { %709 = vmatpush2.bf16.msra.mxu1 %v2875_v47 }
  0x2e   :  { %364 = vmatmul.mubr.bf16.gmra.mxu0 %v2815_v31  ;;  %710 = vmatprep.subr.bf16.mxu1 %v2876_v48  ;;  %v2927_v48 = vld [vmem:[%s3897_s4 + $0x140] ss:$8 sps:$4 sm:$0xff]  }
  0x2f   :  { %2487 = vmatprep.mubr.msk.bf16.mxu0 %vm277_vm0, %v2816_v32  ;;  %1453 = vmatpush1.bf16.msra.mxu0 %v2900_v17 }
  0x30   :  { %1454 = vmatprep.subr.bf16.mxu0 %v2905_v18 }
  0x31   :  { %711 = vmatpush2.bf16.msra.mxu1 %v2878_v51 }
  0x32   :  { %712 = vmatprep.subr.bf16.mxu1 %v2879_v52 }
  0x33   :  { %1455 = vmatpush1.bf16.msra.mxu0 %v2903_v19 }
  0x34   :  { %1456 = vmatprep.subr.bf16.mxu0 %v2908_v20 }
  0x35   :  { %713 = vmatpush2.bf16.msra.mxu1 %v2881_v53 }
  0x36   :  { %374 = vmatmul.mubr.bf16.gmra.mxu0 %v2818_v37  ;;  %714 = vmatprep.subr.bf16.mxu1 %v2882_v54 }
  0x37   :  { %2488 = vmatprep.mubr.msk.bf16.mxu0 %vm277_vm0, %v2819_v38  ;;  %1457 = vmatpush1.bf16.msra.mxu0 %v2906_v21  ;;  %v2915_v38 = vld [vmem:[%s3897_s4 + $0x160] ss:$8 sps:$4 sm:$0xff]  }
  0x38   :  { %1458 = vmatprep.subr.bf16.mxu0 %v2914_v22 }
  0x39   :  { %715 = vmatpush2.bf16.msra.mxu1 %v2884_v57 }
  0x3a   :  { %716 = vmatprep.subr.bf16.mxu1 %v2885_v58 }
  0x3b   :  { %1459 = vmatpush1.bf16.msra.mxu0 %v2912_v23 }
  0x3c   :  { %1460 = vmatprep.subr.bf16.mxu0 %v2920_v24 }
  0x3d   :  { %717 = vmatpush2.bf16.msra.mxu1 %v2887_v59 }
  0x3e   :  { %384 = vmatmul.mubr.bf16.gmra.mxu0 %v2821_v43  ;;  %718 = vmatprep.subr.bf16.mxu1 %v2888_v2  ;;  %v2921_v43 = vld [vmem:[%s3897_s4 + $0x150] ss:$8 sps:$4 sm:$0xff]  }
  0x3f   :  { %2489 = vmatprep.mubr.msk.bf16.mxu0 %vm277_vm0, %v2822_v44  ;;  %1461 = vmatpush1.bf16.msra.mxu0 %v2918_v25 }
  0x40   :  { %1462 = vmatprep.subr.bf16.mxu0 %v2926_v26 }
  0x41   :  { %719 = vmatpush2.bf16.msra.mxu1 %v2890_v3 }
  0x42   :  { %720 = vmatprep.subr.bf16.mxu1 %v2891_v5 }
  0x43   :  { %1463 = vmatpush1.bf16.msra.mxu0 %v2924_v27  ;;  %v2932_v27 = vld [vmem:[%s3897_s4 + $0xf4] ss:$8 sps:$4 sm:$0xff]  }
  0x44   :  { %1464 = vmatprep.subr.bf16.mxu0 %v2932_v27 }
  0x45   :  { %721 = vmatpush2.bf16.msra.mxu1 %v2893_v7 }
  0x46   :  { %394 = vmatmul.mubr.bf16.gmra.mxu0 %v2824_v49  ;;  %1521 = vmatprep.subr.bf16.mxu1 %v2911_v16 }
  0x47   :  { %2490 = vmatprep.mubr.msk.bf16.mxu0 %vm277_vm0, %v2825_v50 }
  0x4e   :  { %404 = vmatmul.mubr.bf16.gmra.mxu0 %v2827_v55 }
  0x4f   :  { %2491 = vmatprep.mubr.msk.bf16.mxu0 %vm277_vm0, %v2828_v56 }
  0x56   :  { %414 = vmatmul.mubr.bf16.gmra.mxu0 %v2830_v60 }
  0x57   :  { %2492 = vmatprep.mubr.msk.bf16.mxu0 %vm277_vm0, %v2831_v61 }
  0x5e   :  { %424 = vmatmul.mubr.bf16.gmra.mxu0 %v2833_v62 }
  0x5f   :  { %2493 = vmatprep.mubr.msk.bf16.mxu0 %vm277_vm0, %v2834_v63 }
  0x66   :  { %434 = vmatmul.mubr.bf16.gmra.mxu0 %v2836_v0 }
  0x67   :  { %2494 = vmatprep.mubr.msk.bf16.mxu0 %vm277_vm0, %v2837_v1 }
  0x6e   :  { %444 = vmatmul.mubr.bf16.gmra.mxu0 %v2839_v4 }
  0x6f   :  { %2495 = vmatprep.mubr.msk.bf16.mxu0 %vm277_vm0, %v2840_v6 }
  0x76   :  { %454 = vmatmul.mubr.bf16.gmra.mxu0 %v2842_v8 }
  0x77   :  { %2496 = vmatprep.mubr.msk.bf16.mxu0 %vm277_vm0, %v2843_v9 }
  0x7e   :  { %464 = vmatmul.mubr.bf16.gmra.mxu0 %v2845_v10 }
  0xe6   :  { %v355_v28 = vpop.f32.mrf.mxu0 }
  0xe8   :  { %v357_v29 = vpop.f32.mrf.mxu0 }
  0xea   :  { %v359_v30 = vpop.f32.mrf.mxu0 }
  0xeb   :  { %v474_v34 = vpack.c.bf16 %v359_v30, %v355_v28  ;;  %v2935_v28 = vld [vmem:[%s3897_s4 + $0x134] ss:$8 sps:$4 sm:$0xff]   ;;  %v2933_v30 = vld [vmem:[%s3897_s4 + $0x130] ss:$8 sps:$4 sm:$0xff]  }
  0xec   :  { %v361_v31 = vpop.f32.mrf.mxu0 }
  0xed   :  { %v475_v32 = vpack.c.bf16 %v361_v31, %v357_v29  ;;  %v2930_v29 = vld [vmem:[%s3897_s4 + $0xf0] ss:$8 sps:$4 sm:$0xff]  }
  0xee   :  { %v365_v35 = vpop.f32.mrf.mxu0  ;;  %1465 = vmatpush2.bf16.msra.mxu0 %v2930_v29 }
  0xef   :  { %722 = vmatprep.mubr.bf16.mxu1 %v475_v32 }
  0xf0   :  { %v367_v37 = vpop.f32.mrf.mxu0  ;;  %723 = vmatmul.mubr.bf16.vlgmr.msra.gmra.mxu1 %v474_v34  ;;  %v2938_v34 = vld [vmem:[%s3897_s4 + $0xe4] ss:$8 sps:$4 sm:$0xff]  }
  0xf1   :  { %1522 = vmatpush1.bf16.msra.mxu1 %v2909_v33  ;;  %1466 = vmatprep.subr.bf16.mxu0 %v2938_v34 }
  0xf2   :  { %v369_v39 = vpop.f32.mrf.mxu0  ;;  %1523 = vmatprep.subr.bf16.mxu1 %v2917_v36 }
  0xf3   :  { %v476_v44 = vpack.c.bf16 %v369_v39, %v365_v35  ;;  %v2941_v35 = vld [vmem:[%s3897_s4 + $0x124] ss:$8 sps:$4 sm:$0xff]  }
  0xf4   :  { %v371_v41 = vpop.f32.mrf.mxu0 }
  0xf5   :  { %v477_v42 = vpack.c.bf16 %v371_v41, %v367_v37  ;;  %1524 = vmatpush1.bf16.msra.mxu1 %v2915_v38  ;;  %v2936_v37 = vld [vmem:[%s3897_s4 + $0xe0] ss:$8 sps:$4 sm:$0xff]   ;;  %v2944_v41 = vld [vmem:[%s3897_s4 + $0xd4] ss:$8 sps:$4 sm:$0xff]  }
  0xf6   :  { %v375_v45 = vpop.f32.mrf.mxu0  ;;  %1525 = vmatprep.subr.bf16.mxu1 %v2923_v40  ;;  %v2939_v38 = vld [vmem:[%s3897_s4 + $0x120] ss:$8 sps:$4 sm:$0xff]   ;;  %1467 = vmatpush2.bf16.msra.mxu0 %v2936_v37 }
  0xf7   :  { %732 = vmatprep.mubr.bf16.mxu1 %v477_v42  ;;  %v2947_v42 = vld [vmem:[%s3897_s4 + $0x114] ss:$8 sps:$4 sm:$0xff]   ;;  %1468 = vmatprep.subr.bf16.mxu0 %v2944_v41 }
  0xf8   :  { %v377_v47 = vpop.f32.mrf.mxu0  ;;  %733 = vmatmul.mubr.bf16.gmra.mxu1 %v476_v44  ;;  %v2945_v44 = vld [vmem:[%s3897_s4 + $0x110] ss:$8 sps:$4 sm:$0xff]  }
  0xf9   :  { %1526 = vmatpush1.bf16.msra.mxu1 %v2921_v43  ;;  %v2942_v43 = vld [vmem:[%s3897_s4 + $0xd0] ss:$8 sps:$4 sm:$0xff]  }
  0xfa   :  { %v379_v49 = vpop.f32.mrf.mxu0  ;;  %1527 = vmatprep.subr.bf16.mxu1 %v2929_v46  ;;  %1469 = vmatpush2.bf16.msra.mxu0 %v2942_v43 }
  0xfb   :  { %v478_v52 = vpack.c.bf16 %v379_v49, %v375_v45  ;;  %v2953_v49 = vld [vmem:[%s3897_s4 + $0x104] ss:$8 sps:$4 sm:$0xff]  }
  0xfc   :  { %v381_v50 = vpop.f32.mrf.mxu0 }
  0xfd   :  { %v479_v51 = vpack.c.bf16 %v381_v50, %v377_v47  ;;  %1528 = vmatpush1.bf16.msra.mxu1 %v2927_v48  ;;  %v2950_v48 = vld [vmem:[%s3897_s4 + $0xc4] ss:$8 sps:$4 sm:$0xff]  }
  0xfe   :  { %v385_v53 = vpop.f32.mrf.mxu0  ;;  %1529 = vmatprep.subr.bf16.mxu1 %v2935_v28  ;;  %1470 = vmatprep.subr.bf16.mxu0 %v2950_v48 }
  0xff   :  { %742 = vmatprep.mubr.bf16.mxu1 %v479_v51  ;;  %v2948_v51 = vld [vmem:[%s3897_s4 + $0xc0] ss:$8 sps:$4 sm:$0xff]  }
 0x100   :  { %v387_v54 = vpop.f32.mrf.mxu0  ;;  %743 = vmatmul.mubr.bf16.gmra.mxu1 %v478_v52  ;;  %v2951_v52 = vld [vmem:[%s3897_s4 + $0x100] ss:$8 sps:$4 sm:$0xff]   ;;  %1471 = vmatpush2.bf16.msra.mxu0 %v2948_v51 }
 0x101   :  { %1530 = vmatpush1.bf16.msra.mxu1 %v2933_v30 }
 0x102   :  { %v389_v55 = vpop.f32.mrf.mxu0  ;;  %1531 = vmatprep.subr.bf16.mxu1 %v2941_v35 }
 0x103   :  { %v480_v58 = vpack.c.bf16 %v389_v55, %v385_v53  ;;  %v2956_v55 = vld [vmem:[%s3897_s4 + $0xb4] ss:$8 sps:$4 sm:$0xff]  }
 0x104   :  { %v391_v56 = vpop.f32.mrf.mxu0  ;;  %1472 = vmatprep.subr.bf16.mxu0 %v2956_v55 }
 0x105   :  { %v481_v57 = vpack.c.bf16 %v391_v56, %v387_v54  ;;  %1532 = vmatpush1.bf16.msra.mxu1 %v2939_v38  ;;  %v2959_v56 = vld [vmem:[%s3897_s4 + $0x1f4] ss:$8 sps:$4 sm:$0xff]   ;;  %v3601_v38 = vld [vmem:[%s3898_s2] ss:$0 sm:$0xff] }
 0x106   :  { %v395_v59 = vpop.f32.mrf.mxu0  ;;  %1533 = vmatprep.subr.bf16.mxu1 %v2947_v42 }
 0x107   :  { %752 = vmatprep.mubr.bf16.mxu1 %v481_v57  ;;  %v2954_v57 = vld [vmem:[%s3897_s4 + $0xb0] ss:$8 sps:$4 sm:$0xff]  }
 0x108   :  { %v397_v60 = vpop.f32.mrf.mxu0  ;;  %753 = vmatmul.mubr.bf16.gmra.mxu1 %v480_v58  ;;  %v2957_v58 = vld [vmem:[%s3897_s4 + $0x1f0] ss:$8 sps:$4 sm:$0xff]   ;;  %1473 = vmatpush2.bf16.msra.mxu0 %v2954_v57  ;;  %v2995_v57 = vld [vmem:[%s3897_s4 + $0x264] ss:$8 sps:$4 sm:$0xff]  }
 0x109   :  { %1534 = vmatpush1.bf16.msra.mxu1 %v2945_v44 }
 0x10a   :  { %v399_v61 = vpop.f32.mrf.mxu0  ;;  %1535 = vmatprep.subr.bf16.mxu1 %v2953_v49 }
 0x10b   :  { %v482_v0 = vpack.c.bf16 %v399_v61, %v395_v59 }
 0x10c   :  { %v401_v62 = vpop.f32.mrf.mxu0 }
 0x10d   :  { %v483_v63 = vpack.c.bf16 %v401_v62, %v397_v60  ;;  %1536 = vmatpush1.bf16.msra.mxu1 %v2951_v52  ;;  %v2962_v62 = vld [vmem:[%s3897_s4 + $0xa4] ss:$8 sps:$4 sm:$0xff]  }
 0x10e   :  { %v405_v1 = vpop.f32.mrf.mxu0  ;;  %1537 = vmatprep.subr.bf16.mxu1 %v2959_v56  ;;  %1474 = vmatprep.subr.bf16.mxu0 %v2962_v62 }
 0x10f   :  { %762 = vmatprep.mubr.bf16.mxu1 %v483_v63  ;;  %v2965_v63 = vld [vmem:[%s3897_s4 + $0x1e4] ss:$8 sps:$4 sm:$0xff]  }
 0x110   :  { %v407_v2 = vpop.f32.mrf.mxu0  ;;  %763 = vmatmul.mubr.bf16.gmra.mxu1 %v482_v0 }
 0x111   :  { %1538 = vmatpush2.bf16.msra.mxu1 %v2957_v58 }
 0x112   :  { %v409_v3 = vpop.f32.mrf.mxu0  ;;  %1539 = vmatprep.subr.bf16.mxu1 %v2965_v63  ;;  %v2998_v63 = vld [vmem:[%s3897_s4 + $0x254] ss:$8 sps:$4 sm:$0xff]  }
 0x113   :  { %v484_v6 = vpack.c.bf16 %v409_v3, %v405_v1  ;;  %v2960_v1 = vld [vmem:[%s3897_s4 + $0xa0] ss:$8 sps:$4 sm:$0xff]   ;;  %v2968_v3 = vld [vmem:[%s3897_s4 + $0x94] ss:$8 sps:$4 sm:$0xff]  }
 0x114   :  { %v411_v4 = vpop.f32.mrf.mxu0  ;;  %1475 = vmatpush2.bf16.msra.mxu0 %v2960_v1 }
 0x115   :  { %v485_v5 = vpack.c.bf16 %v411_v4, %v407_v2  ;;  %v2963_v2 = vld [vmem:[%s3897_s4 + $0x1e0] ss:$8 sps:$4 sm:$0xff]   ;;  %v2971_v4 = vld [vmem:[%s3897_s4 + $0x1d4] ss:$8 sps:$4 sm:$0xff]   ;;  %1476 = vmatprep.subr.bf16.mxu0 %v2968_v3  ;;  %v2996_v3 = vld [vmem:[%s3897_s4 + $0x250] ss:$8 sps:$4 sm:$0xff]  }
 0x116   :  { %v415_v7 = vpop.f32.mrf.mxu0  ;;  %1540 = vmatpush2.bf16.msra.mxu1 %v2963_v2 }
 0x117   :  { %772 = vmatprep.mubr.bf16.mxu1 %v485_v5  ;;  %v2966_v5 = vld [vmem:[%s3897_s4 + $0x90] ss:$8 sps:$4 sm:$0xff]   ;;  %1541 = vmatprep.subr.bf16.mxu1 %v2971_v4 }
 0x118   :  { %v417_v8 = vpop.f32.mrf.mxu0  ;;  %773 = vmatmul.mubr.bf16.gmra.mxu1 %v484_v6  ;;  %v2969_v6 = vld [vmem:[%s3897_s4 + $0x1d0] ss:$8 sps:$4 sm:$0xff]   ;;  %1477 = vmatpush2.bf16.msra.mxu0 %v2966_v5 }
 0x11a   :  { %v419_v9 = vpop.f32.mrf.mxu0  ;;  %1542 = vmatpush2.bf16.msra.mxu1 %v2969_v6  ;;  %v3001_v6 = vld [vmem:[%s3897_s4 + $0x244] ss:$8 sps:$4 sm:$0xff]  }
 0x11b   :  { %v486_v12 = vpack.c.bf16 %v419_v9, %v415_v7  ;;  %v2974_v7 = vld [vmem:[%s3897_s4 + $0x84] ss:$8 sps:$4 sm:$0xff]   ;;  %v2972_v9 = vld [vmem:[%s3897_s4 + $0x80] ss:$8 sps:$4 sm:$0xff]  }
 0x11c   :  { %v421_v10 = vpop.f32.mrf.mxu0  ;;  %1478 = vmatprep.subr.bf16.mxu0 %v2974_v7 }
 0x11d   :  { %v487_v11 = vpack.c.bf16 %v421_v10, %v417_v8  ;;  %v2977_v8 = vld [vmem:[%s3897_s4 + $0x1c4] ss:$8 sps:$4 sm:$0xff]   ;;  %v2975_v10 = vld [vmem:[%s3897_s4 + $0x1c0] ss:$8 sps:$4 sm:$0xff]   ;;  %1479 = vmatpush2.bf16.msra.mxu0 %v2972_v9 }
 0x11e   :  { %v425_v13 = vpop.f32.mrf.mxu0  ;;  %1543 = vmatprep.subr.bf16.mxu1 %v2977_v8 }
 0x11f   :  { %782 = vmatprep.mubr.bf16.mxu1 %v487_v11  ;;  %v2980_v11 = vld [vmem:[%s3897_s4 + $0x1b4] ss:$8 sps:$4 sm:$0xff]   ;;  %1544 = vmatpush2.bf16.msra.mxu1 %v2975_v10  ;;  %v2999_v10 = vld [vmem:[%s3897_s4 + $0x240] ss:$8 sps:$4 sm:$0xff]  }
 0x120   :  { %v427_v14 = vpop.f32.mrf.mxu0  ;;  %783 = vmatmul.mubr.bf16.gmra.mxu1 %v486_v12  ;;  %v2978_v12 = vld [vmem:[%s3897_s4 + $0x1b0] ss:$8 sps:$4 sm:$0xff]   ;;  %1545 = vmatprep.subr.bf16.mxu1 %v2980_v11 }
 0x122   :  { %v429_v15 = vpop.f32.mrf.mxu0 }
 0x123   :  { %v488_v18 = vpack.c.bf16 %v429_v15, %v425_v13  ;;  %v2983_v13 = vld [vmem:[%s3897_s4 + $0x1a4] ss:$8 sps:$4 sm:$0xff]   ;;  %1546 = vmatpush2.bf16.msra.mxu1 %v2978_v12  ;;  %v2986_v15 = vld [vmem:[%s3897_s4 + $0x194] ss:$8 sps:$4 sm:$0xff]  }
 0x124   :  { %v431_v16 = vpop.f32.mrf.mxu0  ;;  %1547 = vmatprep.subr.bf16.mxu1 %v2983_v13  ;;  %v3004_v13 = vld [vmem:[%s3897_s4 + $0x234] ss:$8 sps:$4 sm:$0xff]  }
 0x125   :  { %v489_v17 = vpack.c.bf16 %v431_v16, %v427_v14  ;;  %v2981_v14 = vld [vmem:[%s3897_s4 + $0x1a0] ss:$8 sps:$4 sm:$0xff]   ;;  %v2984_v16 = vld [vmem:[%s3897_s4 + $0x190] ss:$8 sps:$4 sm:$0xff]  }
 0x126   :  { %v435_v19 = vpop.f32.mrf.mxu0 }
 0x127   :  { %792 = vmatprep.mubr.bf16.mxu1 %v489_v17  ;;  %1548 = vmatpush2.bf16.msra.mxu1 %v2981_v14  ;;  %v2989_v17 = vld [vmem:[%s3897_s4 + $0x184] ss:$8 sps:$4 sm:$0xff]  }
 0x128   :  { %v437_v20 = vpop.f32.mrf.mxu0  ;;  %793 = vmatmul.mubr.bf16.gmra.mxu1 %v488_v18  ;;  %1549 = vmatprep.subr.bf16.mxu1 %v2986_v15  ;;  %v2987_v18 = vld [vmem:[%s3897_s4 + $0x180] ss:$8 sps:$4 sm:$0xff]  }
 0x12a   :  { %v439_v21 = vpop.f32.mrf.mxu0 }
 0x12b   :  { %v490_v24 = vpack.c.bf16 %v439_v21, %v435_v19  ;;  %1550 = vmatpush2.bf16.msra.mxu1 %v2984_v16  ;;  %v2992_v19 = vld [vmem:[%s3897_s4 + $0x274] ss:$8 sps:$4 sm:$0xff]  }
 0x12c   :  { %v441_v22 = vpop.f32.mrf.mxu0  ;;  %1551 = vmatprep.subr.bf16.mxu1 %v2989_v17  ;;  %1594 = vmatprep.subr.bf16.mxu0 %v2992_v19  ;;  %v3002_v17 = vld [vmem:[%s3897_s4 + $0x230] ss:$8 sps:$4 sm:$0xff]  }
 0x12d   :  { %v491_v23 = vpack.c.bf16 %v441_v22, %v437_v20 }
 0x12e   :  { %v445_v25 = vpop.f32.mrf.mxu0 }
 0x12f   :  { %802 = vmatprep.mubr.bf16.mxu1 %v491_v23  ;;  %1552 = vmatpush2.bf16.msra.mxu1 %v2987_v18 }
 0x130   :  { %v447_v26 = vpop.f32.mrf.mxu0  ;;  %803 = vmatmul.mubr.bf16.gmra.mxu1 %v490_v24 }
 0x132   :  { %v449_v31 = vpop.f32.mrf.mxu0 }
 0x133   :  { %v492_v32 = vpack.c.bf16 %v449_v31, %v445_v25 }
 0x134   :  { %v451_v33 = vpop.f32.mrf.mxu0 }
 0x135   :  { %v493_v36 = vpack.c.bf16 %v451_v33, %v447_v26 }
 0x136   :  { %v455_v39 = vpop.f32.mrf.mxu0 }
 0x137   :  { %812 = vmatprep.mubr.bf16.mxu1 %v493_v36 }
 0x138   :  { %v457_v40 = vpop.f32.mrf.mxu0  ;;  %813 = vmatmul.mubr.bf16.gmra.mxu1 %v492_v32 }
 0x13a   :  { %v459_v45 = vpop.f32.mrf.mxu0 }
 0x13b   :  { %v494_v46 = vpack.c.bf16 %v459_v45, %v455_v39 }
 0x13c   :  { %v461_v47 = vpop.f32.mrf.mxu0 }
 0x13d   :  { %v495_v50 = vpack.c.bf16 %v461_v47, %v457_v40 }
 0x13e   :  { %v465_v53 = vpop.f32.mrf.mxu0 }
 0x13f   :  { %822 = vmatprep.mubr.bf16.mxu1 %v495_v50 }
 0x140   :  { %823 = vmatmul.mubr.bf16.gmra.mxu1 %v494_v46  ;;  %v467_v54 = vpop.f32.mrf.mxu0 }
 0x142   :  { %v469_v59 = vpop.f32.mrf.mxu0 }
 0x143   :  { %v496_v60 = vpack.c.bf16 %v469_v59, %v465_v53  ;;  %v2990_v53 = vld [vmem:[%s3897_s4 + $0x270] ss:$8 sps:$4 sm:$0xff]  }
 0x144   :  { %v471_v61 = vpop.f32.mrf.mxu0 }
 0x145   :  { %v497_v0 = vpack.c.bf16 %v471_v61, %v467_v54 }
 0x147   :  { %832 = vmatprep.mubr.bf16.mxu1 %v497_v0 }
 0x148   :  { %833 = vmatmul.mubr.bf16.gmra.mxu1 %v496_v60  ;;  %v2993_v60 = vld [vmem:[%s3897_s4 + $0x260] ss:$8 sps:$4 sm:$0xff]  }
 0x1b0   :  { %v724_v20 = vpop.f32.mrf.mxu1 }
 0x1b2   :  { %v726_v21 = vpop.f32.mrf.mxu1 }
 0x1b3   :  { %v843_v33 = vmax.f32 %v724_v20, %v726_v21  ;;  %v3007_v21 = vld [vmem:[%s3897_s4 + $0x224] ss:$8 sps:$4 sm:$0xff]  }
 0x1b4   :  { %v728_v22 = vpop.f32.mrf.mxu1 }
 0x1b6   :  { %v730_v23 = vpop.f32.mrf.mxu1 }
 0x1b7   :  { %v844_v30 = vmax.f32 %v728_v22, %v730_v23 }
 0x1b8   :  { %v734_v24 = vpop.f32.mrf.mxu1 }
 0x1b9   :  { %v867_v36 = vmax.f32 %v843_v33, %v844_v30 }
 0x1ba   :  { %v736_v25 = vpop.f32.mrf.mxu1 }
 0x1bb   :  { %v845_v31 = vmax.f32 %v734_v24, %v736_v25  ;;  %v886_v44 = vadd.f32 %v3601_v38, %v867_v36  ;;  %v3005_v24 = vld [vmem:[%s3897_s4 + $0x220] ss:$8 sps:$4 sm:$0xff]  }
 0x1bc   :  { %v738_v26 = vpop.f32.mrf.mxu1 }
 0x1bd   :  { %v898_v50 = vmax.f32 %v886_v44, 0.0 }
 0x1be   :  { %v740_v27 = vpop.f32.mrf.mxu1 }
 0x1bf   :  { %v846_v28 = vmax.f32 %v738_v26, %v740_v27  ;;  %v3010_v27 = vld [vmem:[%s3897_s4 + $0x214] ss:$8 sps:$4 sm:$0xff]  }
 0x1c0   :  { %v744_v29 = vpop.f32.mrf.mxu1 }
 0x1c1   :  { %v868_v34 = vmax.f32 %v845_v31, %v846_v28  ;;  %v3008_v31 = vld [vmem:[%s3897_s4 + $0x210] ss:$8 sps:$4 sm:$0xff]  }
 0x1c2   :  { %v746_v32 = vpop.f32.mrf.mxu1 }
 0x1c3   :  { %v847_v39 = vmax.f32 %v744_v29, %v746_v32  ;;  %v887_v41 = vadd.f32 %v3601_v38, %v868_v34  ;;  %v3013_v34 = vld [vmem:[%s3897_s4 + $0x204] ss:$8 sps:$4 sm:$0xff]  }
 0x1c4   :  { %v748_v35 = vpop.f32.mrf.mxu1 }
 0x1c5   :  { %v899_v47 = vmax.f32 %v887_v41, 0.0 }
 0x1c6   :  { %v750_v37 = vpop.f32.mrf.mxu1 }
 0x1c7   :  { %v848_v40 = vmax.f32 %v748_v35, %v750_v37  ;;  %v2696_v54 = vpack.c.bf16 %v899_v47, %v898_v50 }
 0x1c8   :  { %v754_v42 = vpop.f32.mrf.mxu1 }
 0x1c9   :  { %v869_v43 = vmax.f32 %v847_v39, %v848_v40  ;;  %v3011_v39 = vld [vmem:[%s3897_s4 + $0x200] ss:$8 sps:$4 sm:$0xff]  }
 0x1ca   :  { %v756_v45 = vpop.f32.mrf.mxu1 }
 0x1cb   :  { %v888_v46 = vadd.f32 %v3601_v38, %v869_v43  ;;  %v849_v58 = vmax.f32 %v754_v42, %v756_v45 }
 0x1cc   :  { %v758_v48 = vpop.f32.mrf.mxu1 }
 0x1cd   :  { %v900_v49 = vmax.f32 %v888_v46, 0.0 }
 0x1ce   :  { %v760_v51 = vpop.f32.mrf.mxu1 }
 0x1cf   :  { %v2697_v52 = vpack.c.bf16 %v900_v49, %v899_v47  ;;  %v850_v55 = vmax.f32 %v758_v48, %v760_v51 }
 0x1d0   :  { %v764_v56 = vpop.f32.mrf.mxu1 }
 0x1d1   :  { %1480 = vmatprep.mubr.bf16.mxu0 %v2697_v52  ;;  %v870_v61 = vmax.f32 %v849_v58, %v850_v55 }
 0x1d2   :  { %v766_v59 = vpop.f32.mrf.mxu1  ;;  %1481 = vmatmul.mubr.bf16.vlgmr.msra.gmra.mxu0 %v2696_v54 }
 0x1d3   :  { %1595 = vmatpush1.bf16.msra.mxu0 %v2990_v53  ;;  %v851_v1 = vmax.f32 %v764_v56, %v766_v59  ;;  %v889_v4 = vadd.f32 %v3601_v38, %v870_v61 }
 0x1d4   :  { %v768_v62 = vpop.f32.mrf.mxu1  ;;  %1596 = vmatprep.subr.bf16.mxu0 %v2995_v57 }
 0x1d5   :  { %v901_v11 = vmax.f32 %v889_v4, 0.0 }
 0x1d6   :  { %v770_v0 = vpop.f32.mrf.mxu1 }
 0x1d7   :  { %v852_v2 = vmax.f32 %v768_v62, %v770_v0  ;;  %1597 = vmatpush1.bf16.msra.mxu0 %v2993_v60  ;;  %v2698_v20 = vpack.c.bf16 %v901_v11, %v900_v49 }
 0x1d8   :  { %v774_v5 = vpop.f32.mrf.mxu1  ;;  %1598 = vmatprep.subr.bf16.mxu0 %v2998_v63 }
 0x1d9   :  { %v871_v7 = vmax.f32 %v851_v1, %v852_v2 }
 0x1da   :  { %v776_v8 = vpop.f32.mrf.mxu1 }
 0x1db   :  { %v890_v9 = vadd.f32 %v3601_v38, %v871_v7  ;;  %1599 = vmatpush1.bf16.msra.mxu0 %v2996_v3  ;;  %v853_v22 = vmax.f32 %v774_v5, %v776_v8 }
 0x1dc   :  { %v778_v12 = vpop.f32.mrf.mxu1  ;;  %1600 = vmatprep.subr.bf16.mxu0 %v3001_v6  ;;  %v3106_v6 = vmov 0  }
 0x1dd   :  { %v902_v14 = vmax.f32 %v890_v9, 0.0 }
 0x1de   :  { %v780_v15 = vpop.f32.mrf.mxu1 }
 0x1df   :  { %v2699_v16 = vpack.c.bf16 %v902_v14, %v901_v11  ;;  %1601 = vmatpush1.bf16.msra.mxu0 %v2999_v10  ;;  %v854_v18 = vmax.f32 %v778_v12, %v780_v15 }
 0x1e0   :  { %v784_v19 = vpop.f32.mrf.mxu1  ;;  %1602 = vmatprep.subr.bf16.mxu0 %v3004_v13 }
 0x1e1   :  { %1490 = vmatprep.mubr.bf16.mxu0 %v2699_v16  ;;  %1553 = vmatprep.mubr.bf16.mxu1 %v2699_v16  ;;  %v872_v25 = vmax.f32 %v853_v22, %v854_v18 }
 0x1e2   :  { %v786_v23 = vpop.f32.mrf.mxu1  ;;  %1491 = vmatmul.mubr.bf16.gmra.mxu0 %v2698_v20  ;;  %1554 = vmatmul.mubr.bf16.vlgmr.msra.gmra.mxu1 %v2698_v20 }
 0x1e3   :  { %1603 = vmatpush1.bf16.msra.mxu0 %v3002_v17  ;;  %v855_v29 = vmax.f32 %v784_v19, %v786_v23  ;;  %v891_v32 = vadd.f32 %v3601_v38, %v872_v25 }
 0x1e4   :  { %v788_v26 = vpop.f32.mrf.mxu1  ;;  %1604 = vmatprep.subr.bf16.mxu0 %v3007_v21 }
 0x1e5   :  { %v903_v40 = vmax.f32 %v891_v32, 0.0  ;;  %v3022_v32 = vld [vmem:[%s3899_s6 + $0x54] ss:$8 sps:$4 sm:$0xff]  }
 0x1e6   :  { %v790_v28 = vpop.f32.mrf.mxu1 }
 0x1e7   :  { %v856_v30 = vmax.f32 %v788_v26, %v790_v28  ;;  %1605 = vmatpush1.bf16.msra.mxu0 %v3005_v24  ;;  %v2700_v47 = vpack.c.bf16 %v903_v40, %v902_v14  ;;  %v3016_v26 = vld [vmem:[%s3899_s6 + $0x74] ss:$8 sps:$4 sm:$0xff]  }
 0x1e8   :  { %v794_v33 = vpop.f32.mrf.mxu1  ;;  %1606 = vmatprep.subr.bf16.mxu0 %v3010_v27  ;;  %v3014_v27 = vld [vmem:[%s3899_s6 + $0x70] ss:$8 sps:$4 sm:$0xff]   ;;  %1867 = vmatprep.subr.bf16.mxu1 %v3016_v26 }
 0x1e9   :  { %v873_v35 = vmax.f32 %v855_v29, %v856_v30  ;;  %1868 = vmatpush1.bf16.msra.mxu1 %v3014_v27  ;;  %v3017_v29 = vld [vmem:[%s3899_s6 + $0x60] ss:$8 sps:$4 sm:$0xff]   ;;  %v3019_v30 = vld [vmem:[%s3899_s6 + $0x64] ss:$8 sps:$4 sm:$0xff]  }
 0x1ea   :  { %v796_v36 = vpop.f32.mrf.mxu1  ;;  %1869 = vmatprep.subr.bf16.mxu1 %v3019_v30 }
 0x1eb   :  { %v892_v37 = vadd.f32 %v3601_v38, %v873_v35  ;;  %1607 = vmatpush1.bf16.msra.mxu0 %v3008_v31  ;;  %v857_v48 = vmax.f32 %v794_v33, %v796_v36  ;;  %v3020_v31 = vld [vmem:[%s3899_s6 + $0x50] ss:$8 sps:$4 sm:$0xff]   ;;  %v3023_v35 = vld [vmem:[%s3899_s6 + $0x40] ss:$8 sps:$4 sm:$0xff]   ;;  %v3028_v36 = vld [vmem:[%s3899_s6 + $0x34] ss:$8 sps:$4 sm:$0xff]  }
 0x1ec   :  { %v798_v41 = vpop.f32.mrf.mxu1  ;;  %1608 = vmatprep.subr.bf16.mxu0 %v3013_v34  ;;  %v3025_v34 = vld [vmem:[%s3899_s6 + $0x44] ss:$8 sps:$4 sm:$0xff]  }
 0x1ed   :  { %v904_v42 = vmax.f32 %v892_v37, 0.0  ;;  %1870 = vmatpush1.bf16.msra.mxu1 %v3017_v29  ;;  %v3026_v37 = vld [vmem:[%s3899_s6 + $0x30] ss:$8 sps:$4 sm:$0xff]  }
 0x1ee   :  { %v800_v43 = vpop.f32.mrf.mxu1  ;;  %1871 = vmatprep.subr.bf16.mxu1 %v3022_v32 }
 0x1ef   :  { %v2701_v44 = vpack.c.bf16 %v904_v42, %v903_v40  ;;  %1609 = vmatpush1.bf16.msra.mxu0 %v3011_v39  ;;  %v858_v45 = vmax.f32 %v798_v41, %v800_v43  ;;  %v3031_v39 = vld [vmem:[%s3899_s6 + $0x24] ss:$8 sps:$4 sm:$0xff]   ;;  %v3029_v40 = vld [vmem:[%s3899_s6 + $0x20] ss:$8 sps:$4 sm:$0xff]   ;;  %v3034_v41 = vld [vmem:[%s3899_s6 + $0x14] ss:$8 sps:$4 sm:$0xff]  }
 0x1f0   :  { %v804_v46 = vpop.f32.mrf.mxu1  ;;  %v3037_v43 = vld [vmem:[%s3899_s6 + $0x4] ss:$8 sps:$4 sm:$0xff]  }
 0x1f1   :  { %1500 = vmatprep.mubr.bf16.mxu0 %v2701_v44  ;;  %1563 = vmatprep.mubr.bf16.mxu1 %v2701_v44  ;;  %v874_v50 = vmax.f32 %v857_v48, %v858_v45  ;;  %v3035_v44 = vld [vmem:[%s3899_s6] ss:$8 sps:$4 sm:$0xff]   ;;  %v3040_v45 = vld [vmem:[%s3899_s6 + $0xf4] ss:$8 sps:$4 sm:$0xff]  }
 0x1f2   :  { %v806_v49 = vpop.f32.mrf.mxu1  ;;  %1501 = vmatmul.mubr.bf16.gmra.mxu0 %v2700_v47  ;;  %1564 = vmatmul.mubr.bf16.gmra.mxu1 %v2700_v47  ;;  %v3041_v48 = vld [vmem:[%s3899_s6 + $0xe0] ss:$8 sps:$4 sm:$0xff]  }
 0x1f3   :  { %v859_v53 = vmax.f32 %v804_v46, %v806_v49  ;;  %v893_v55 = vadd.f32 %v3601_v38, %v874_v50  ;;  %1872 = vmatpush1.bf16.msra.mxu1 %v3020_v31  ;;  %v3038_v46 = vld [vmem:[%s3899_s6 + $0xf0] ss:$8 sps:$4 sm:$0xff]   ;;  %v3046_v49 = vld [vmem:[%s3899_s6 + $0xd4] ss:$8 sps:$4 sm:$0xff]  }
 0x1f4   :  { %v808_v51 = vpop.f32.mrf.mxu1  ;;  %1873 = vmatprep.subr.bf16.mxu1 %v3025_v34  ;;  %v3044_v50 = vld [vmem:[%s3899_s6 + $0xd0] ss:$8 sps:$4 sm:$0xff]  }
 0x1f5   :  { %v905_v60 = vmax.f32 %v893_v55, 0.0  ;;  %v3055_v55 = vld [vmem:[%s3899_s6 + $0xa4] ss:$8 sps:$4 sm:$0xff]  }
 0x1f6   :  { %v810_v52 = vpop.f32.mrf.mxu1 }
 0x1f7   :  { %v860_v54 = vmax.f32 %v808_v51, %v810_v52  ;;  %v2702_v4 = vpack.c.bf16 %v905_v60, %v904_v42  ;;  %1874 = vmatpush1.bf16.msra.mxu1 %v3023_v35  ;;  %v3032_v42 = vld [vmem:[%s3899_s6 + $0x10] ss:$8 sps:$4 sm:$0xff]   ;;  %v3049_v51 = vld [vmem:[%s3899_s6 + $0xc4] ss:$8 sps:$4 sm:$0xff]   ;;  %v3047_v52 = vld [vmem:[%s3899_s6 + $0xc0] ss:$8 sps:$4 sm:$0xff]  }
 0x1f8   :  { %v814_v56 = vpop.f32.mrf.mxu1  ;;  %1875 = vmatprep.subr.bf16.mxu1 %v3028_v36 }
 0x1f9   :  { %v875_v57 = vmax.f32 %v859_v53, %v860_v54  ;;  %v3052_v53 = vld [vmem:[%s3899_s6 + $0xb4] ss:$8 sps:$4 sm:$0xff]   ;;  %v3050_v54 = vld [vmem:[%s3899_s6 + $0xb0] ss:$8 sps:$4 sm:$0xff]  }
 0x1fa   :  { %v816_v58 = vpop.f32.mrf.mxu1 }
 0x1fb   :  { %v894_v59 = vadd.f32 %v3601_v38, %v875_v57  ;;  %v861_v1 = vmax.f32 %v814_v56, %v816_v58  ;;  %1876 = vmatpush1.bf16.msra.mxu1 %v3026_v37  ;;  %v3053_v56 = vld [vmem:[%s3899_s6 + $0xa0] ss:$8 sps:$4 sm:$0xff]   ;;  %v3058_v57 = vld [vmem:[%s3899_s6 + $0x94] ss:$8 sps:$4 sm:$0xff]   ;;  %v3056_v58 = vld [vmem:[%s3899_s6 + $0x90] ss:$8 sps:$4 sm:$0xff]  }
 0x1fc   :  { %v818_v61 = vpop.f32.mrf.mxu1  ;;  %1877 = vmatprep.subr.bf16.mxu1 %v3031_v39 }
 0x1fd   :  { %v906_v62 = vmax.f32 %v894_v59, 0.0  ;;  %v3061_v59 = vld [vmem:[%s3899_s6 + $0x84] ss:$8 sps:$4 sm:$0xff]  }
 0x1fe   :  { %v820_v63 = vpop.f32.mrf.mxu1 }
 0x1ff   :  { %v2703_v0 = vpack.c.bf16 %v906_v62, %v905_v60  ;;  %v862_v2 = vmax.f32 %v818_v61, %v820_v63  ;;  %1878 = vmatpush1.bf16.msra.mxu1 %v3029_v40  ;;  %v3059_v60 = vld [vmem:[%s3899_s6 + $0x80] ss:$8 sps:$4 sm:$0xff]   ;;  %v3062_v61 = vld [vmem:[%s3900_s7 + $0x78] sm:$0xff]   ;;  %v3064_v63 = vld [vmem:[%s3900_s7 + $0x70] sm:$0xff]  }
 0x200   :  { %v824_v3 = vpop.f32.mrf.mxu1  ;;  %1879 = vmatprep.subr.bf16.mxu1 %v3034_v41  ;;  %2707 = vmatprep.subr.bf16.mxu0 %v3062_v61 }
 0x201   :  { %1510 = vmatprep.mubr.bf16.mxu0 %v2703_v0  ;;  %1573 = vmatprep.mubr.bf16.mxu1 %v2703_v0  ;;  %v876_v7 = vmax.f32 %v861_v1, %v862_v2  ;;  %v3065_v0 = vld [vmem:[%s3900_s7 + $0x30] sm:$0xff]  }
 0x202   :  { %v826_v5 = vpop.f32.mrf.mxu1  ;;  %1511 = vmatmul.mubr.bf16.gmra.mxu0 %v2702_v4  ;;  %1574 = vmatmul.mubr.bf16.gmra.mxu1 %v2702_v4 }
 0x203   :  { %1626 = vmatprep.mubr.bf16.mxu0 %v3106_v6  ;;  %v863_v9 = vmax.f32 %v824_v3, %v826_v5  ;;  %v895_v12 = vadd.f32 %v3601_v38, %v876_v7  ;;  %1880 = vmatpush1.bf16.msra.mxu1 %v3032_v42 }
 0x204   :  { %v828_v8 = vpop.f32.mrf.mxu1  ;;  %1881 = vmatprep.subr.bf16.mxu1 %v3037_v43 }
 0x205   :  { %v907_v17 = vmax.f32 %v895_v12, 0.0 }
 0x206   :  { %v830_v10 = vpop.f32.mrf.mxu1 }
 0x207   :  { %v864_v11 = vmax.f32 %v828_v8, %v830_v10  ;;  %v2704_v24 = vpack.c.bf16 %v907_v17, %v906_v62  ;;  %1882 = vmatpush1.bf16.msra.mxu1 %v3035_v44  ;;  %v3063_v62 = vld [vmem:[%s3900_s7 + $0x38] sm:$0xff]  }
 0x208   :  { %v834_v13 = vpop.f32.mrf.mxu1  ;;  %1883 = vmatprep.subr.bf16.mxu1 %v3040_v45 }
 0x209   :  { %v877_v14 = vmax.f32 %v863_v9, %v864_v11 }
 0x20a   :  { %1627 = vmatmul.mubr.bf16.vlgmr.msra.gmra.mxu0 %v2700_v47  ;;  %v836_v15 = vpop.f32.mrf.mxu1  ;;  %v3043_v47 = vld [vmem:[%s3899_s6 + $0xe4] ss:$8 sps:$4 sm:$0xff]  }
 0x20b   :  { %v896_v16 = vadd.f32 %v3601_v38, %v877_v14  ;;  %1636 = vmatprep.mubr.bf16.mxu0 %v3106_v6  ;;  %v865_v22 = vmax.f32 %v834_v13, %v836_v15  ;;  %1884 = vmatpush2.bf16.msra.mxu1 %v3038_v46 }
 0x20c   :  { %v838_v18 = vpop.f32.mrf.mxu1  ;;  %1885 = vmatprep.subr.bf16.mxu1 %v3043_v47  ;;  %2708 = vmatpush3.bf16.msra.mxu0 %v3063_v62 }
 0x20d   :  { %v908_v19 = vmax.f32 %v896_v16, 0.0  ;;  %2709 = vmatprep.subr.bf16.mxu0 %v3064_v63 }
 0x20e   :  { %v840_v20 = vpop.f32.mrf.mxu1 }
 0x20f   :  { %v2705_v21 = vpack.c.bf16 %v908_v19, %v907_v17  ;;  %v866_v23 = vmax.f32 %v838_v18, %v840_v20  ;;  %1886 = vmatpush2.bf16.msra.mxu1 %v3041_v48 }
 0x210   :  { %1887 = vmatprep.subr.bf16.mxu1 %v3046_v49  ;;  %2710 = vmatpush3.bf16.msra.mxu0 %v3065_v0 }
 0x211   :  { %1583 = vmatprep.mubr.bf16.mxu1 %v2705_v21  ;;  %v878_v25 = vmax.f32 %v865_v22, %v866_v23 }
 0x212   :  { %1584 = vmatmul.mubr.bf16.gmra.mxu1 %v2704_v24  ;;  %1637 = vmatmul.mubr.bf16.gmra.mxu0 %v2702_v4 }
 0x213   :  { %1646 = vmatprep.mubr.bf16.mxu0 %v3106_v6  ;;  %v897_v28 = vadd.f32 %v3601_v38, %v878_v25  ;;  %1888 = vmatpush2.bf16.msra.mxu1 %v3044_v50 }
 0x214   :  { %1889 = vmatprep.subr.bf16.mxu1 %v3049_v51 }
 0x215   :  { %v909_v38 = vmax.f32 %v897_v28, 0.0 }
 0x217   :  { %v2706_v33 = vpack.c.bf16 %v909_v38, %v908_v19  ;;  %1890 = vmatpush2.bf16.msra.mxu1 %v3047_v52 }
 0x218   :  { %1891 = vmatprep.subr.bf16.mxu1 %v3052_v53 }
 0x21a   :  { %1647 = vmatmul.mubr.bf16.gmra.mxu0 %v2704_v24 }
 0x21b   :  { %1656 = vmatprep.mubr.bf16.mxu0 %v3106_v6  ;;  %1892 = vmatpush2.bf16.msra.mxu1 %v3050_v54 }
 0x21c   :  { %1893 = vmatprep.subr.bf16.mxu1 %v3055_v55 }
 0x21f   :  { %1894 = vmatpush2.bf16.msra.mxu1 %v3053_v56 }
 0x220   :  { %1895 = vmatprep.subr.bf16.mxu1 %v3058_v57 }
 0x222   :  { %1657 = vmatmul.mubr.bf16.gmra.mxu0 %v2706_v33 }
 0x223   :  { %1896 = vmatpush2.bf16.msra.mxu1 %v3056_v58 }
 0x224   :  { %1897 = vmatprep.subr.bf16.mxu1 %v3061_v59 }
 0x227   :  { %1898 = vmatpush2.bf16.msra.mxu1 %v3059_v60 }
 0x292   :  { %v1482_v1 = vpop.f32.mrf.mxu0 }
 0x294   :  { %v1484_v2 = vpop.f32.mrf.mxu0 }
 0x296   :  { %v1486_v3 = vpop.f32.mrf.mxu0 }
 0x298   :  { %v1488_v4 = vpop.f32.mrf.mxu0 }
 0x2a2   :  { %v1492_v5 = vpop.f32.mrf.mxu0  ;;  %v1555_v7 = vpop.f32.mrf.mxu1 }
 0x2a3   :  { %v1556_v38 = vadd.f32 %v1555_v7, %v1482_v1 }
 0x2a4   :  { %v1494_v6 = vpop.f32.mrf.mxu0  ;;  %v1557_v9 = vpop.f32.mrf.mxu1 }
 0x2a5   :  { %v1558_v31 = vadd.f32 %v1557_v9, %v1484_v2 }
 0x2a6   :  { %v1496_v8 = vpop.f32.mrf.mxu0  ;;  %v1559_v12 = vpop.f32.mrf.mxu1 }
 0x2a7   :  { %v1560_v28 = vadd.f32 %v1559_v12, %v1486_v3 }
 0x2a8   :  { %v1498_v10 = vpop.f32.mrf.mxu0  ;;  %v1561_v14 = vpop.f32.mrf.mxu1 }
 0x2a9   :  { %v1562_v32 = vadd.f32 %v1561_v14, %v1488_v4 }
 0x2b2   :  { %v1502_v11 = vpop.f32.mrf.mxu0  ;;  %v1565_v15 = vpop.f32.mrf.mxu1 }
 0x2b3   :  { %v1566_v49 = vadd.f32 %v1565_v15, %v1492_v5 }
 0x2b4   :  { %v1504_v13 = vpop.f32.mrf.mxu0  ;;  %v1567_v17 = vpop.f32.mrf.mxu1 }
 0x2b5   :  { %v1568_v47 = vadd.f32 %v1567_v17, %v1494_v6 }
 0x2b6   :  { %v1506_v16 = vpop.f32.mrf.mxu0  ;;  %v1569_v20 = vpop.f32.mrf.mxu1 }
 0x2b7   :  { %v1570_v44 = vadd.f32 %v1569_v20, %v1496_v8 }
 0x2b8   :  { %v1508_v18 = vpop.f32.mrf.mxu0  ;;  %v1571_v23 = vpop.f32.mrf.mxu1 }
 0x2b9   :  { %v1572_v48 = vadd.f32 %v1571_v23, %v1498_v10 }
 0x2c2   :  { %v3768_v19 = vpop.f32.mrf.mxu0  ;;  %v1575_v25 = vpop.f32.mrf.mxu1 }
 0x2c3   :  { %v1576_v1 = vadd.f32 %v1575_v25, %v1502_v11 }
 0x2c4   :  { %v3770_v21 = vpop.f32.mrf.mxu0  ;;  %v1577_v29 = vpop.f32.mrf.mxu1 }
 0x2c5   :  { %v1578_v63 = vadd.f32 %v1577_v29, %v1504_v13  ;;  %v3070_v29 = vld [vmem:[%s3900_s7 + $0x58] sm:$0xff]  }
 0x2c6   :  { %v1516_v22 = vpop.f32.mrf.mxu0  ;;  %v1579_v37 = vpop.f32.mrf.mxu1 }
 0x2c7   :  { %v1580_v61 = vadd.f32 %v1579_v37, %v1506_v16 }
 0x2c8   :  { %v1518_v24 = vpop.f32.mrf.mxu0  ;;  %v1581_v45 = vpop.f32.mrf.mxu1 }
 0x2c9   :  { %v1582_v0 = vadd.f32 %v1581_v45, %v1508_v18 }
 0x2ca   :  { %v1628_v26 = vpop.f32.mrf.mxu0 }
 0x2cb   :  { %v1629_v39 = vadd.f32 %v1628_v26, %v1556_v38  ;;  %v3074_v38 = vld [vmem:[%s3900_s7 + $0x48] sm:$0xff]  }
 0x2cc   :  { %v1630_v27 = vpop.f32.mrf.mxu0 }
 0x2cd   :  { %v1631_v35 = vadd.f32 %v1630_v27, %v1558_v31  ;;  %v3072_v31 = vld [vmem:[%s3900_s7 + $0x50] sm:$0xff]  }
 0x2ce   :  { %v1632_v30 = vpop.f32.mrf.mxu0 }
 0x2cf   :  { %v1633_v33 = vadd.f32 %v1632_v30, %v1560_v28  ;;  %v3071_v30 = vld [vmem:[%s3900_s7 + $0x18] sm:$0xff]  }
 0x2d0   :  { %v1634_v34 = vpop.f32.mrf.mxu0 }
 0x2d1   :  { %v1635_v36 = vadd.f32 %v1634_v34, %v1562_v32  ;;  %v1667_v42 = vpack.c.bf16 %v1633_v33, %v1629_v39  ;;  %v3073_v32 = vld [vmem:[%s3900_s7 + $0x10] sm:$0xff]   ;;  %v3075_v33 = vld [vmem:[%s3900_s7 + $0x8] sm:$0xff]   ;;  %v3076_v34 = vld [vmem:[%s3900_s7 + $0x40] sm:$0xff]  }
 0x2d2   :  { %v1638_v40 = vpop.f32.mrf.mxu0  ;;  %v1585_v50 = vpop.f32.mrf.mxu1 }
 0x2d3   :  { %v1668_v41 = vpack.c.bf16 %v1635_v36, %v1631_v35  ;;  %v1639_v55 = vadd.f32 %v1638_v40, %v1566_v49  ;;  %v1586_v11 = vadd.f32 %v1585_v50, %v3768_v19  ;;  %v3068_v19 = vld [vmem:[%s3900_s7 + $0x60] sm:$0xff]   ;;  %v3078_v36 = vld [vmem:[%s3900_s7 + $0xf8] sm:$0xff]  }
 0x2d4   :  { %v1640_v43 = vpop.f32.mrf.mxu0  ;;  %v1587_v58 = vpop.f32.mrf.mxu1  ;;  %v3077_v35 = vld [vmem:[%s3900_s7] sm:$0xff]  }
 0x2d5   :  { %1899 = vmatprep.mubr.bf16.mxu1 %v1668_v41  ;;  %v1641_v53 = vadd.f32 %v1640_v43, %v1568_v47  ;;  %v1588_v16 = vadd.f32 %v1587_v58, %v3770_v21  ;;  %v3067_v21 = vld [vmem:[%s3900_s7 + $0x28] sm:$0xff]  }
 0x2d6   :  { %v1642_v46 = vpop.f32.mrf.mxu0  ;;  %1900 = vmatmul.mubr.bf16.vlgmr.msra.gmra.mxu1 %v1667_v42  ;;  %v1589_v2 = vpop.f32.mrf.mxu1 }
 0x2d7   :  { %v1643_v51 = vadd.f32 %v1642_v46, %v1570_v44  ;;  %v1590_v15 = vadd.f32 %v1589_v2, %v1516_v22  ;;  %v3066_v22 = vld [vmem:[%s3900_s7 + $0x68] sm:$0xff]  }
 0x2d8   :  { %v1644_v52 = vpop.f32.mrf.mxu0  ;;  %v1591_v10 = vpop.f32.mrf.mxu1  ;;  %2711 = vmatprep.subr.bf16.mxu0 %v3066_v22 }
 0x2d9   :  { %v1645_v54 = vadd.f32 %v1644_v52, %v1572_v48  ;;  %v1669_v59 = vpack.c.bf16 %v1643_v51, %v1639_v55  ;;  %v1592_v13 = vadd.f32 %v1591_v10, %v1518_v24  ;;  %2712 = vmatpush3.bf16.msra.mxu0 %v3067_v21  ;;  %v3069_v24 = vld [vmem:[%s3900_s7 + $0x20] sm:$0xff]  }
 0x2da   :  { %v1648_v56 = vpop.f32.mrf.mxu0  ;;  %2713 = vmatprep.subr.bf16.mxu0 %v3068_v19  ;;  %v2653_v48 = vld [vmem:[%s3901_s5] ss:$0 sm:$0xff] }
 0x2db   :  { %v1670_v57 = vpack.c.bf16 %v1645_v54, %v1641_v53  ;;  %v1649_v7 = vadd.f32 %v1648_v56, %v1576_v1  ;;  %v3080_v1 = vld [vmem:[%s3900_s7 + $0xf0] sm:$0xff]   ;;  %v3084_v10 = vld [vmem:[%s3900_s7 + $0xe0] sm:$0xff]  }
 0x2dc   :  { %v1650_v60 = vpop.f32.mrf.mxu0  ;;  %v3092_v21 = vld [vmem:[%s3900_s7 + $0xc0] sm:$0xff]  }
 0x2dd   :  { %1909 = vmatprep.mubr.bf16.mxu1 %v1670_v57  ;;  %v1651_v5 = vadd.f32 %v1650_v60, %v1578_v63  ;;  %2714 = vmatpush3.bf16.msra.mxu0 %v3069_v24  ;;  %v3093_v19 = vld [vmem:[%s3900_s7 + $0x80] sm:$0xff]  }
 0x2de   :  { %v1652_v62 = vpop.f32.mrf.mxu0  ;;  %1910 = vmatmul.mubr.bf16.gmra.mxu1 %v1669_v59  ;;  %2715 = vmatprep.subr.bf16.mxu0 %v3070_v29 }
 0x2df   :  { %v1653_v3 = vadd.f32 %v1652_v62, %v1580_v61  ;;  %v3079_v62 = vld [vmem:[%s3900_s7 + $0xb8] sm:$0xff]  }
 0x2e0   :  { %v1654_v4 = vpop.f32.mrf.mxu0 }
 0x2e1   :  { %v1655_v6 = vadd.f32 %v1654_v4, %v1582_v0  ;;  %v1671_v12 = vpack.c.bf16 %v1653_v3, %v1649_v7  ;;  %2716 = vmatpush3.bf16.msra.mxu0 %v3071_v30  ;;  %v3081_v3 = vld [vmem:[%s3900_s7 + $0xb0] sm:$0xff]   ;;  %v3107_v30 = vmov 0.0  }
 0x2e2   :  { %v1658_v8 = vpop.f32.mrf.mxu0  ;;  %2717 = vmatprep.subr.bf16.mxu0 %v3072_v31  ;;  %2760 = vmatprep.subr.bf16.mxu1 %v3107_v30  ;;  %v3094_v31 = vld [vmem:[%s3902_s9 + $0x38] sm:$0xff]  }
 0x2e3   :  { %v1672_v9 = vpack.c.bf16 %v1655_v6, %v1651_v5  ;;  %v1659_v26 = vadd.f32 %v1658_v8, %v1586_v11  ;;  %v3082_v5 = vld [vmem:[%s3900_s7 + $0xe8] sm:$0xff]   ;;  %v3087_v11 = vld [vmem:[%s3900_s7 + $0x98] sm:$0xff]   ;;  %2761 = vmatpush3.bf16.msra.mxu1 %v3094_v31 }
 0x2e4   :  { %v1660_v14 = vpop.f32.mrf.mxu0  ;;  %2762 = vmatprep.subr.bf16.mxu1 %v3107_v30 }
 0x2e5   :  { %1919 = vmatprep.mubr.bf16.mxu1 %v1672_v9  ;;  %v1661_v23 = vadd.f32 %v1660_v14, %v1588_v16  ;;  %2718 = vmatpush3.bf16.msra.mxu0 %v3073_v32  ;;  %v3083_v9 = vld [vmem:[%s3900_s7 + $0xa8] sm:$0xff]   ;;  %v3095_v32 = vld [vmem:[%s3902_s9 + $0x30] sm:$0xff]  }
 0x2e6   :  { %v1662_v17 = vpop.f32.mrf.mxu0  ;;  %1920 = vmatmul.mubr.bf16.gmra.mxu1 %v1671_v12  ;;  %2719 = vmatprep.subr.bf16.mxu0 %v3074_v38  ;;  %v3096_v38 = vld [vmem:[%s3902_s9 + $0x28] sm:$0xff]  }
 0x2e7   :  { %v1663_v18 = vadd.f32 %v1662_v17, %v1590_v15  ;;  %v3085_v15 = vld [vmem:[%s3900_s7 + $0xa0] sm:$0xff]   ;;  %v3086_v17 = vld [vmem:[%s3900_s7 + $0xd8] sm:$0xff]   ;;  %2763 = vmatpush3.bf16.msra.mxu1 %v3095_v32 }
 0x2e8   :  { %v1664_v20 = vpop.f32.mrf.mxu0  ;;  %2764 = vmatprep.subr.bf16.mxu1 %v3107_v30 }
 0x2e9   :  { %v1665_v25 = vadd.f32 %v1664_v20, %v1592_v13  ;;  %v1673_v28 = vpack.c.bf16 %v1663_v18, %v1659_v26  ;;  %2720 = vmatpush3.bf16.msra.mxu0 %v3075_v33  ;;  %v3088_v20 = vld [vmem:[%s3900_s7 + $0xd0] sm:$0xff]   ;;  %v3097_v33 = vld [vmem:[%s3902_s9 + $0x20] sm:$0xff]  }
 0x2ea   :  { %2721 = vmatprep.subr.bf16.mxu0 %v3076_v34  ;;  %v3098_v34 = vld [vmem:[%s3902_s9 + $0x18] sm:$0xff]  }
 0x2eb   :  { %v1674_v27 = vpack.c.bf16 %v1665_v25, %v1661_v23  ;;  %v3089_v25 = vld [vmem:[%s3900_s7 + $0x90] sm:$0xff]   ;;  %2765 = vmatpush3.bf16.msra.mxu1 %v3096_v38 }
 0x2ec   :  { %2766 = vmatprep.subr.bf16.mxu1 %v3107_v30 }
 0x2ed   :  { %1929 = vmatprep.mubr.bf16.mxu1 %v1674_v27  ;;  %2722 = vmatpush3.bf16.msra.mxu0 %v3077_v35  ;;  %v3090_v27 = vld [vmem:[%s3900_s7 + $0xc8] sm:$0xff]   ;;  %v3099_v35 = vld [vmem:[%s3902_s9 + $0x10] sm:$0xff]  }
 0x2ee   :  { %1930 = vmatmul.mubr.bf16.gmra.mxu1 %v1673_v28  ;;  %2729 = vmatprep.subr.bf16.mxu0 %v3078_v36  ;;  %v3091_v28 = vld [vmem:[%s3900_s7 + $0x88] sm:$0xff]  }
 0x2ef   :  { %2767 = vmatpush3.bf16.msra.mxu1 %v3097_v33  ;;  %v3100_v36 = vld [vmem:[%s3902_s9 + $0x8] sm:$0xff]   ;;  %2776 = vmatprep.mubr.msk.bf16.mxu1 %vm3108_vm2, %v3107_v30 }
 0x2f0   :  { %2768 = vmatprep.subr.bf16.mxu1 %v3107_v30 }
 0x2f3   :  { %2769 = vmatpush3.bf16.msra.mxu1 %v3098_v34 }
 0x2f4   :  { %2770 = vmatprep.subr.bf16.mxu1 %v3107_v30 }
 0x2f7   :  { %2771 = vmatpush3.bf16.msra.mxu1 %v3099_v35 }
 0x2f8   :  { %2772 = vmatprep.subr.bf16.mxu1 %v3107_v30 }
 0x2fb   :  { %2773 = vmatpush3.bf16.msra.mxu1 %v3100_v36 }
 0x2fc   :  { %2774 = vmatprep.subr.bf16.mxu1 %v3107_v30 }
 0x396   :  { %v1901_v37 = vpop.f32.mrf.mxu1 }
 0x398   :  { %v1903_v39 = vpop.f32.mrf.mxu1 }
 0x399   :  { %v1940_v44 = vmax.f32 %v1901_v37, %v1903_v39  ;;  %v3101_v37 = vld [vmem:[%s3902_s9] sm:$0xff]  }
 0x39a   :  { %v1905_v40 = vpop.f32.mrf.mxu1  ;;  %2775 = vmatpush3.bf16.msra.mxu1 %v3101_v37 }
 0x39c   :  { %v1907_v41 = vpop.f32.mrf.mxu1 }
 0x39d   :  { %v1941_v42 = vmax.f32 %v1905_v40, %v1907_v41 }
 0x39e   :  { %v1911_v43 = vpop.f32.mrf.mxu1 }
 0x39f   :  { %v1948_v46 = vmax.f32 %v1940_v44, %v1941_v42  ;;  %v2654_v44 = vld [vmem:[%s3903_s8] ss:$0 sm:$0xff] }
 0x3a0   :  { %v1913_v45 = vpop.f32.mrf.mxu1 }
 0x3a1   :  { %v1942_v50 = vmax.f32 %v1911_v43, %v1913_v45  ;;  %v1959_v52 = vadd.f32 %v2653_v48, %v1948_v46 }
 0x3a2   :  { %v1915_v47 = vpop.f32.mrf.mxu1 }
 0x3a3   :  { %v1963_v57 = vmax.f32 %v1959_v52, 0.0 }
 0x3a4   :  { %v1917_v49 = vpop.f32.mrf.mxu1 }
 0x3a5   :  { %v1943_v51 = vmax.f32 %v1915_v47, %v1917_v49  ;;  %v1967_v63 = vpack.c.bf16 %v1963_v57, %v1963_v57 }
 0x3a6   :  { %v1921_v53 = vpop.f32.mrf.mxu1 }
 0x3a7   :  { %v1949_v54 = vmax.f32 %v1942_v50, %v1943_v51 }
 0x3a8   :  { %v1923_v55 = vpop.f32.mrf.mxu1 }
 0x3a9   :  { %v1960_v56 = vadd.f32 %v2653_v48, %v1949_v54  ;;  %v1944_v23 = vmax.f32 %v1921_v53, %v1923_v55  ;;  %v2687_v54 = vld [vmem:[%s3904_s10] ss:$0 sm:$0xff] }
 0x3aa   :  { %v1925_v58 = vpop.f32.mrf.mxu1 }
 0x3ab   :  { %v1964_v59 = vmax.f32 %v1960_v56, 0.0 }
 0x3ac   :  { %v1927_v60 = vpop.f32.mrf.mxu1 }
 0x3ad   :  { %v1968_v61 = vpack.c.bf16 %v1964_v59, %v1964_v59  ;;  %v1945_v18 = vmax.f32 %v1925_v58, %v1927_v60 }
 0x3ae   :  { %v1931_v0 = vpop.f32.mrf.mxu1 }
 0x3af   :  { %2266 = vmatprep.mubr.bf16.mxu0 %v1968_v61  ;;  %v1950_v26 = vmax.f32 %v1944_v23, %v1945_v18 }
 0x3b0   :  { %v1933_v2 = vpop.f32.mrf.mxu1  ;;  %2267 = vmatmul.mubr.bf16.vlgmr.msra.gmra.mxu0 %v1967_v63 }
 0x3b1   :  { %2730 = vmatpush3.bf16.msra.mxu0 %v3079_v62  ;;  %v1946_v7 = vmax.f32 %v1931_v0, %v1933_v2  ;;  %v1961_v22 = vadd.f32 %v2653_v48, %v1950_v26 }
 0x3b2   :  { %v1935_v4 = vpop.f32.mrf.mxu1  ;;  %2731 = vmatprep.subr.bf16.mxu0 %v3080_v1 }
 0x3b3   :  { %v1965_v24 = vmax.f32 %v1961_v22, 0.0 }
 0x3b4   :  { %v1937_v6 = vpop.f32.mrf.mxu1 }
 0x3b5   :  { %v1947_v8 = vmax.f32 %v1935_v4, %v1937_v6  ;;  %2732 = vmatpush3.bf16.msra.mxu0 %v3081_v3  ;;  %v1969_v29 = vpack.c.bf16 %v1965_v24, %v1965_v24 }
 0x3b6   :  { %2733 = vmatprep.subr.bf16.mxu0 %v3082_v5 }
 0x3b7   :  { %v1951_v12 = vmax.f32 %v1946_v7, %v1947_v8 }
 0x3b9   :  { %v1962_v14 = vadd.f32 %v2653_v48, %v1951_v12  ;;  %2734 = vmatpush3.bf16.msra.mxu0 %v3083_v9 }
 0x3ba   :  { %2735 = vmatprep.subr.bf16.mxu0 %v3084_v10 }
 0x3bb   :  { %v1966_v16 = vmax.f32 %v1962_v14, 0.0 }
 0x3bd   :  { %2736 = vmatpush3.bf16.msra.mxu0 %v3085_v15  ;;  %v1970_v13 = vpack.c.bf16 %v1966_v16, %v1966_v16 }
 0x3be   :  { %2737 = vmatprep.subr.bf16.mxu0 %v3086_v17 }
 0x3bf   :  { %2306 = vmatprep.mubr.bf16.mxu0 %v1970_v13 }
 0x3c1   :  { %2738 = vmatpush3.bf16.msra.mxu0 %v3087_v11 }
 0x3c2   :  { %2739 = vmatprep.subr.bf16.mxu0 %v3088_v20 }
 0x3c5   :  { %2740 = vmatpush3.bf16.msra.mxu0 %v3089_v25 }
 0x3c6   :  { %2741 = vmatprep.subr.bf16.mxu0 %v3090_v27 }
 0x3c9   :  { %2742 = vmatpush3.bf16.msra.mxu0 %v3091_v28 }
 0x3ca   :  { %2743 = vmatprep.subr.bf16.mxu0 %v3092_v21 }
 0x3cd   :  { %2744 = vmatpush3.bf16.msra.mxu0 %v3093_v19 }
 0x3d0   :  { %2307 = vmatmul.mubr.bf16.vlgmr.msra.gmra.mxu0 %v1969_v29 }
 0x470   :  { %v2723_v39 = vpop.f32.mrf.mxu0 }
 0x472   :  { %v2724_v40 = vpop.f32.mrf.mxu0 }
 0x473   :  { %v2725_v43 = vadd.f32 %v2724_v40, %v2723_v39 }
 0x474   :  { %v2726_v41 = vpop.f32.mrf.mxu0 }
 0x475   :  { %v2269_v47 = vadd.f32 %v2725_v43, %v2654_v44 }
 0x476   :  { %v2727_v42 = vpop.f32.mrf.mxu0 }
 0x490   :  { %v2745_v45 = vpop.f32.mrf.mxu0 }
 0x492   :  { %v2746_v46 = vpop.f32.mrf.mxu0 }
 0x493   :  { %v2747_v48 = vadd.f32 %v2746_v46, %v2745_v45 }
 0x494   :  { %v2748_v49 = vpop.f32.mrf.mxu0 }
 0x495   :  { %v2309_v50 = vadd.f32 %v2747_v48, %v2269_v47 }
 0x496   :  { %v2749_v51 = vpop.f32.mrf.mxu0 }
 0x497   :  { %v2314_v52 = vmax.f32 %v2309_v50, 0.0 }
 0x499   :  { %v2315_v53 = vpack.c.bf16 %v2314_v52, %v2314_v52 }
 0x49b   :  { %2777 = vmatmul.mubr.bf16.vlgmr.msra.gmra.mxu1 %v2315_v53 }
 0x55b   :  { %v2421_v55 = vpop.f32.mrf.mxu1 }
 0x55c   :  { %v2422_v56 = vadd.f32 %v2687_v54, %v2421_v55 }
 0x55d   :  { %v2778_v57 = vpop.f32.mrf.mxu1 }
 0x55e   :  { %2427 = vmax.xlane.f32.xlu0 %v2422_v56 }
 0x55f   :  { %v2424_v58 = vpop.f32.mrf.mxu1 }
 0x561   :  { %v2779_v59 = vpop.f32.mrf.mxu1 }
 0x5e7   :  { %v2428_v60 = vpop.xlane.xlu0 %2427 }
 0x5e8   :  { %v2429_v61 = vsub.f32 %v2422_v56, %v2428_v60 }
 0x5ea   :  { %v2430_v62 = vmul.f32 1.442695, %v2429_v61 }
 0x5ec   :  { %3102 = vpow2.f32 %v2430_v62 }
 0x5f9   :  { %v3103_v63 = vpop.eup %3102 }
 0x5fa   :  { %2432 = vadd.xlane.f32.xlu0 %v3103_v63 }
 0x683   :  { %v2433_v0 = vpop.xlane.xlu0 %2432 }
 0x684   :  { %3104 = vlog2.f32 %v2433_v0 }
 0x691   :  { %v3105_v1 = vpop.eup %3104 }
 0x692   :  { %v2435_v2 = vmul.f32 0.6931472, %v3105_v1 }
 0x694   :  { %v2436_v3 = vsub.f32 %v2429_v61, %v2435_v2 }
 0x696   :  { %2437 = vst [vmem:[%s3905_s11] sm:$0xff] %v2436_v3 }

</bundles_post_ra>
